<compile_context>
chip_gen: v7x
topology: tpu7x:2x2x1
jax: 0.10.0
libtpu: 0.0.40
codegen_flags: <defaults>
</compile_context>

<pallas_src>
import functools

import jax
import jax.numpy as jnp
from jax.experimental import pallas as pl
from jax.experimental.pallas import tpu as pltpu

EPS = 1e-5
LANE = 128
VMEM_LIMIT = 48 * 1024 * 1024   # < 64 MiB physical on v7x, < 128 MiB on v5e/v6e


def _round_up(x, m):
    return (x + m - 1) // m * m


def _pick_rows_tile(rows, max_tile=2048, min_steps=4):
    """Largest row tile <= max_tile that divides `rows`, preferring >= min_steps
    grid steps (keeps both v7x TensorCores busy and gives the pipeline depth)."""
    cands = (2048, 1024, 512, 256, 128, 64, 32, 16, 8)
    for t in cands:
        if t <= max_tile and rows % t == 0 and rows // t >= min_steps:
            return t
    for t in cands:
        if rows % t == 0:
            return t
    return rows


def _pad_vec(v, n):
    return jnp.pad(v.astype(jnp.float32), (0, n - v.shape[0]))


# --------------------------------------------------------------------------
# Kernels
# --------------------------------------------------------------------------

def _pointwise_conv_kernel(x_ref, sc_ref, sh_ref, w_ref, o_ref, st_ref, *,
                           pre_bn_relu):
    """[optional BN(scale,shift)+ReLU] -> 1x1 conv (matmul) -> partial stats."""
    x = x_ref[...]
    if pre_bn_relu:
        xf = x.astype(jnp.float32) * sc_ref[...] + sh_ref[...]
        x = jnp.maximum(xf, 0.0).astype(jnp.bfloat16)
    h = jnp.dot(x, w_ref[...], preferred_element_type=jnp.float32)
    o_ref[...] = h.astype(o_ref.dtype)
    s = jnp.sum(h, axis=0, keepdims=True)
    ss = jnp.sum(h * h, axis=0, keepdims=True)
    st_ref[...] = jnp.concatenate([s, ss], axis=-1)[None]      # (1, 1, 2*kout)


def _conv3x3_kernel(h1_ref, sc_ref, sh_ref, w2_ref, o_ref, st_ref):
    """BN1+ReLU -> 3x3 conv (stride 1, pad 1) -> partial stats.  One image/block."""
    _, H, W, Pp = h1_ref.shape
    HW = H * W

    # BN1 (precomputed scale/shift) + ReLU, computed in f32.
    h1 = h1_ref[0].astype(jnp.float32)                          # (H, W, Pp)
    h1n = jnp.maximum(h1 * sc_ref[...] + sh_ref[...], 0.0)

    # Zero-pad one image row above/below (dy taps) and build the dx = -1 / +1
    # taps by shifting along W with an explicit zero column (no wrap, no mask).
    zrow = jnp.zeros((1, W, Pp), jnp.float32)
    hp = jnp.concatenate([zrow, h1n, zrow], axis=0)             # (H+2, W, Pp)
    zcol = jnp.zeros((H + 2, 1, Pp), jnp.float32)
    tap_m = jnp.concatenate([zcol, hp[:, :W - 1, :]], axis=1)   # dx = -1
    tap_p = jnp.concatenate([hp[:, 1:, :], zcol], axis=1)       # dx = +1

    # Cast to bf16 before flattening so only bf16 tap buffers feed the MXU.
    taps = tuple(t.astype(jnp.bfloat16).reshape((H + 2) * W, Pp)
                 for t in (tap_m, hp, tap_p))

    # 9 accumulating K=Pp matmuls: tap (ky, kx) is an aligned row window of the
    # flattened, H-padded tap buffer.
    acc = jnp.zeros((HW, Pp), jnp.float32)
    for ky in range(3):
        for kx in range(3):
            acc = acc + jnp.dot(taps[kx][ky * W:ky * W + HW, :],
                                w2_ref[ky, kx],
                                preferred_element_type=jnp.float32)

    o_ref[...] = acc.reshape(1, H, W, Pp).astype(o_ref.dtype)
    s = jnp.sum(acc, axis=0, keepdims=True)
    ss = jnp.sum(acc * acc, axis=0, keepdims=True)
    st_ref[...] = jnp.concatenate([s, ss], axis=-1)[None]       # (1, 1, 2*Pp)


def _bn_residual_relu_kernel(h3_ref, x_ref, sc_ref, sh_ref, o_ref):
    """BN3 (precomputed scale/shift) + identity residual + final ReLU."""
    y = (h3_ref[...].astype(jnp.float32) * sc_ref[...] + sh_ref[...]
         + x_ref[...].astype(jnp.float32))
    o_ref[...] = jnp.maximum(y, 0.0).astype(o_ref.dtype)


# --------------------------------------------------------------------------
# pallas_call wrappers
# --------------------------------------------------------------------------

def _pointwise_conv(rows, scale, shift, w, *, pre_bn_relu):
    r, kin = rows.shape
    kout = w.shape[1]
    tr = _pick_rows_tile(r)
    t = r // tr
    kernel = functools.partial(_pointwise_conv_kernel, pre_bn_relu=pre_bn_relu)
    return pl.pallas_call(
        kernel,
        out_shape=(jax.ShapeDtypeStruct((r, kout), jnp.bfloat16),
                   jax.ShapeDtypeStruct((t, 1, 2 * kout), jnp.float32)),
        grid=(t,),
        in_specs=[
            pl.BlockSpec((tr, kin), lambda i: (i, 0)),
            pl.BlockSpec((1, kin), lambda i: (0, 0)),
            pl.BlockSpec((1, kin), lambda i: (0, 0)),
            pl.BlockSpec((kin, kout), lambda i: (0, 0)),
        ],
        out_specs=(
            pl.BlockSpec((tr, kout), lambda i: (i, 0)),
            pl.BlockSpec((1, 1, 2 * kout), lambda i: (i, 0, 0)),
        ),
        compiler_params=pltpu.CompilerParams(
            dimension_semantics=("parallel",),
            vmem_limit_bytes=VMEM_LIMIT),
    )(rows, scale, shift, w)


def _conv3x3(h1_img, scale, shift, w2m):
    n, h, w, pp = h1_img.shape
    return pl.pallas_call(
        _conv3x3_kernel,
        out_shape=(jax.ShapeDtypeStruct((n, h, w, pp), jnp.bfloat16),
                   jax.ShapeDtypeStruct((n, 1, 2 * pp), jnp.float32)),
        grid=(n,),
        in_specs=[
            pl.BlockSpec((1, h, w, pp), lambda i: (i, 0, 0, 0)),
            pl.BlockSpec((1, pp), lambda i: (0, 0)),
            pl.BlockSpec((1, pp), lambda i: (0, 0)),
            pl.BlockSpec((3, 3, pp, pp), lambda i: (0, 0, 0, 0)),
        ],
        out_specs=(
            pl.BlockSpec((1, h, w, pp), lambda i: (i, 0, 0, 0)),
            pl.BlockSpec((1, 1, 2 * pp), lambda i: (i, 0, 0)),
        ),
        compiler_params=pltpu.CompilerParams(
            dimension_semantics=("parallel",),
            vmem_limit_bytes=VMEM_LIMIT),
    )(h1_img, scale, shift, w2m)


def _bn_residual_relu(h3_rows, x_rows, scale, shift):
    r, c = h3_rows.shape
    tr = _pick_rows_tile(r)
    t = r // tr
    return pl.pallas_call(
        _bn_residual_relu_kernel,
        out_shape=jax.ShapeDtypeStruct((r, c), jnp.float32),
        grid=(t,),
        in_specs=[
            pl.BlockSpec((tr, c), lambda i: (i, 0)),
            pl.BlockSpec((tr, c), lambda i: (i, 0)),
            pl.BlockSpec((1, c), lambda i: (0, 0)),
            pl.BlockSpec((1, c), lambda i: (0, 0)),
        ],
        out_specs=pl.BlockSpec((tr, c), lambda i: (i, 0)),
        compiler_params=pltpu.CompilerParams(
            dimension_semantics=("parallel",),
            vmem_limit_bytes=VMEM_LIMIT),
    )(h3_rows, x_rows, scale, shift)


def _finalize_stats(partials, gamma, beta, count):
    """Fold per-tile (sum ++ sumsq) partials + gamma/beta into BN scale/shift."""
    c = gamma.shape[0]
    tot = jnp.sum(partials.reshape(-1, 2 * c), axis=0)
    mean = tot[:c] / count
    # NOTE: E[x^2]-E[x]^2 in f32; clamped at 0 (biased batch variance).
    var = jnp.maximum(tot[c:] / count - mean * mean, 0.0)
    scale = gamma * jax.lax.rsqrt(var + EPS)
    shift = beta - mean * scale
    return scale[None, :], shift[None, :]


# --------------------------------------------------------------------------
# Forward pass
# --------------------------------------------------------------------------

@jax.jit
def bottleneck_forward(x_nchw, params):
    """params: (w1 (P,Cin,1,1), w2 (P,P,3,3), w3 (4P,P,1,1), g1,b1,g2,b2,g3,b3)."""
    w1, w2, w3, g1, b1, g2, b2, g3, b3 = params
    N, Cin, H, W = x_nchw.shape
    P = w1.shape[0]
    Cout = w3.shape[0]
    assert Cin == Cout, "identity residual requires inplanes == 4 * planes"

    Cp = _round_up(Cin, LANE)
    Pp = _round_up(P, LANE)
    Cop = _round_up(Cout, LANE)
    R = N * H * W

    # Single padded NHWC bf16 copy of x; feeds conv1 AND the residual path.
    x_rows_bf = jnp.pad(jnp.transpose(x_nchw, (0, 2, 3, 1)),
                        ((0, 0), (0, 0), (0, 0), (0, Cp - Cin))
                        ).astype(jnp.bfloat16).reshape(R, Cp)

    # 1x1 conv weights -> (Cin, Cout) matmul layout, channel padded, bf16.
    w1m = jnp.pad(jnp.transpose(w1[:, :, 0, 0]),
                  ((0, Cp - Cin), (0, Pp - P))).astype(jnp.bfloat16)
    w3m = jnp.pad(jnp.transpose(w3[:, :, 0, 0]),
                  ((0, Pp - P), (0, Cop - Cout))).astype(jnp.bfloat16)
    # 3x3 conv weights -> (ky, kx, Cin, Cout) matmul layout, channel padded, bf16.
    w2m = jnp.pad(jnp.transpose(w2, (2, 3, 1, 0)),
                  ((0, 0), (0, 0), (0, Pp - P), (0, Pp - P))).astype(jnp.bfloat16)

    g1p, b1p = _pad_vec(g1, Pp), _pad_vec(b1, Pp)
    g2p, b2p = _pad_vec(g2, Pp), _pad_vec(b2, Pp)
    g3p, b3p = _pad_vec(g3, Cop), _pad_vec(b3, Cop)
    unused = jnp.zeros((1, Cp), jnp.float32)

    # stage 1: conv1 (1x1) + BN1 partial stats
    h1_rows, s1 = _pointwise_conv(x_rows_bf, unused, unused, w1m,
                                  pre_bn_relu=False)
    sc1, sh1 = _finalize_stats(s1, g1p, b1p, R)

    # stage 2: BN1 + ReLU + conv2 (3x3) + BN2 partial stats
    h2_img, s2 = _conv3x3(h1_rows.reshape(N, H, W, Pp), sc1, sh1, w2m)
    sc2, sh2 = _finalize_stats(s2, g2p, b2p, R)

    # stage 3: BN2 + ReLU + conv3 (1x1) + BN3 partial stats
    h3_rows, s3 = _pointwise_conv(h2_img.reshape(R, Pp), sc2, sh2, w3m,
                                  pre_bn_relu=True)
    sc3, sh3 = _finalize_stats(s3, g3p, b3p, R)

    # stage 4: BN3 + identity residual + ReLU (re-reads the single bf16 x copy)
    out_rows = _bn_residual_relu(h3_rows, x_rows_bf, sc3, sh3)

    out = out_rows.reshape(N, H, W, Cop)[..., :Cout]
    return jnp.transpose(out, (0, 3, 1, 2))       # NHWC -> NCHW


# --------------------------------------------------------------------------
# Pure-JAX reference (PyTorch NCHW semantics) for validation
# --------------------------------------------------------------------------

@jax.jit
def bottleneck_reference(x_nchw, params):
    w1, w2, w3, g1, b1, g2, b2, g3, b3 = params

    def bn(y, g, b):
        mean = y.mean(axis=(0, 2, 3), keepdims=True)
        var = ((y - mean) ** 2).mean(axis=(0, 2, 3), keepdims=True)
        return (y - mean) * jax.lax.rsqrt(var + EPS) * g.reshape(1, -1, 1, 1) \
            + b.reshape(1, -1, 1, 1)

    def conv(x, w, pad):
        return jax.lax.conv_general_dilated(
            x, w, window_strides=(1, 1), padding=[(pad, pad)] * 2,
            dimension_numbers=("NCHW", "OIHW", "NCHW"))

    out = jax.nn.relu(bn(conv(x_nchw, w1, 0), g1, b1))
    out = jax.nn.relu(bn(conv(out, w2, 1), g2, b2))
    out = bn(conv(out, w3, 0), g3, b3)
    return jax.nn.relu(out + x_nchw)


if __name__ == "__main__":
    planes = 8
    inplanes = 4 * planes          # identity residual requires inplanes == 4*planes
    N, H, W = 2, 16, 16

    key = jax.random.PRNGKey(0)
    ks = jax.random.split(key, 10)
    x = jax.random.normal(ks[0], (N, inplanes, H, W), jnp.float32)

    w1 = 0.1 * jax.random.normal(ks[1], (planes, inplanes, 1, 1), jnp.float32)
    w2 = 0.1 * jax.random.normal(ks[2], (planes, planes, 3, 3), jnp.float32)
    w3 = 0.1 * jax.random.normal(ks[3], (4 * planes, planes, 1, 1), jnp.float32)
    g1 = 1.0 + 0.1 * jax.random.normal(ks[4], (planes,), jnp.float32)
    b1 = 0.1 * jax.random.normal(ks[5], (planes,), jnp.float32)
    g2 = 1.0 + 0.1 * jax.random.normal(ks[6], (planes,), jnp.float32)
    b2 = 0.1 * jax.random.normal(ks[7], (planes,), jnp.float32)
    g3 = 1.0 + 0.1 * jax.random.normal(ks[8], (4 * planes,), jnp.float32)
    b3 = 0.1 * jax.random.normal(ks[9], (4 * planes,), jnp.float32)
    params = (w1, w2, w3, g1, b1, g2, b2, g3, b3)

    out = jax.block_until_ready(bottleneck_forward(x, params))
    ref = jax.block_until_ready(bottleneck_reference(x, params))

    assert out.shape == x.shape
    # bf16 matmul operands / bf16 intermediates vs. f32 reference -> relaxed tol.
    assert jnp.allclose(out, ref, atol=1e-1, rtol=1e-1), \
        float(jnp.max(jnp.abs(out - ref)))

    print("KERNEL_OK")
</pallas_src>

<mosaic_0001>
module attributes {stable_mosaic.version = 11 : i64} {
  func.func @_pointwise_conv_kernel(%arg0: i32, %arg1: memref<128x128xbf16, #tpu.memory_space<vmem>>, %arg2: memref<1x128xf32, #tpu.memory_space<vmem>>, %arg3: memref<1x128xf32, #tpu.memory_space<vmem>>, %arg4: memref<128x128xbf16, #tpu.memory_space<vmem>>, %arg5: memref<128x128xbf16, #tpu.memory_space<vmem>>, %arg6: memref<1x1x256xf32, #tpu.memory_space<vmem>>) attributes {dimension_semantics = [#tpu.dimension_semantics<parallel>], iteration_bounds = array<i64: 4>, scalar_prefetch = 0 : i64, scratch_operands = 0 : i64, tpu.core_type = #tpu.core_type<tc>, window_params = [{transform_indices = @transform_0, window_bounds = array<i64: 128, 128>}, {pipeline_mode = #tpu.pipeline_mode<synchronous>, transform_indices = @transform_1, window_bounds = array<i64: 1, 128>}, {pipeline_mode = #tpu.pipeline_mode<synchronous>, transform_indices = @transform_2, window_bounds = array<i64: 1, 128>}, {pipeline_mode = #tpu.pipeline_mode<synchronous>, transform_indices = @transform_3, window_bounds = array<i64: 128, 128>}, {transform_indices = @transform_4, window_bounds = array<i64: 128, 128>}, {transform_indices = @transform_5, window_bounds = array<i64: 1, 1, 256>}]} {
    %c0 = arith.constant 0 : index
    %c0_0 = arith.constant 0 : index
    %0 = vector.load %arg1[%c0, %c0_0] : memref<128x128xbf16, #tpu.memory_space<vmem>>, vector<128x128xbf16>
    %c0_1 = arith.constant 0 : index
    %c0_2 = arith.constant 0 : index
    %1 = vector.load %arg4[%c0_1, %c0_2] : memref<128x128xbf16, #tpu.memory_space<vmem>>, vector<128x128xbf16>
    %cst = arith.constant dense<0.000000e+00> : vector<128x128xf32>
    %2 = tpu.matmul %0, %1, %cst {dimension_numbers = #tpu.dot_dimension_numbers<[1], [0], [0], [1], [0, 0, 1, 1], [], []>} : vector<128x128xbf16>, vector<128x128xbf16>, vector<128x128xf32> -> vector<128x128xf32>
    %3 = arith.truncf %2 : vector<128x128xf32> to vector<128x128xbf16>
    %c0_3 = arith.constant 0 : index
    %c0_4 = arith.constant 0 : index
    %4 = vector.load %arg5[%c0_3, %c0_4] : memref<128x128xbf16, #tpu.memory_space<vmem>>, vector<128x128xbf16>
    tpu.vector_store %arg5[%c0_3, %c0_4], %3 {strides = array<i32>} : memref<128x128xbf16, #tpu.memory_space<vmem>>, vector<128x128xbf16>,
    %cst_5 = arith.constant dense<0.000000e+00> : vector<128xf32>
    %5 = vector.multi_reduction <add>, %2, %cst_5 [0] : vector<128x128xf32> to vector<128xf32>
    %6 = vector.shape_cast %5 : vector<128xf32> to vector<1x128xf32>
    %7 = arith.mulf %2, %2 : vector<128x128xf32>
    %cst_6 = arith.constant dense<0.000000e+00> : vector<128xf32>
    %8 = vector.multi_reduction <add>, %7, %cst_6 [0] : vector<128x128xf32> to vector<128xf32>
    %9 = vector.shape_cast %8 : vector<128xf32> to vector<1x128xf32>
    %10 = tpu.concatenate %6, %9 in 1 : vector<1x128xf32>, vector<1x128xf32> -> vector<1x256xf32>
    %11 = vector.shape_cast %10 : vector<1x256xf32> to vector<1x1x256xf32>
    %c0_7 = arith.constant 0 : index
    %c0_8 = arith.constant 0 : index
    %c0_9 = arith.constant 0 : index
    %12 = vector.load %arg6[%c0_7, %c0_8, %c0_9] : memref<1x1x256xf32, #tpu.memory_space<vmem>>, vector<1x1x256xf32>
    tpu.vector_store %arg6[%c0_7, %c0_8, %c0_9], %11 {strides = array<i32>} : memref<1x1x256xf32, #tpu.memory_space<vmem>>, vector<1x1x256xf32>,
    return
  }
  func.func @transform_0(%arg0: i32) -> (i32, i32) {
    %c0_i32 = arith.constant 0 : i32
    %c0_i32_0 = arith.constant 0 : i32
    return %arg0, %c0_i32 : i32, i32
  }
  func.func @transform_1(%arg0: i32) -> (i32, i32) {
    %c0_i32 = arith.constant 0 : i32
    %c0_i32_0 = arith.constant 0 : i32
    %c0_i32_1 = arith.constant 0 : i32
    return %c0_i32, %c0_i32_0 : i32, i32
  }
  func.func @transform_2(%arg0: i32) -> (i32, i32) {
    %c0_i32 = arith.constant 0 : i32
    %c0_i32_0 = arith.constant 0 : i32
    %c0_i32_1 = arith.constant 0 : i32
    return %c0_i32, %c0_i32_0 : i32, i32
  }
  func.func @transform_3(%arg0: i32) -> (i32, i32) {
    %c0_i32 = arith.constant 0 : i32
    %c0_i32_0 = arith.constant 0 : i32
    %c0_i32_1 = arith.constant 0 : i32
    return %c0_i32, %c0_i32_0 : i32, i32
  }
  func.func @transform_4(%arg0: i32) -> (i32, i32) {
    %c0_i32 = arith.constant 0 : i32
    %c0_i32_0 = arith.constant 0 : i32
    return %arg0, %c0_i32 : i32, i32
  }
  func.func @transform_5(%arg0: i32) -> (i32, i32, i32) {
    %c0_i32 = arith.constant 0 : i32
    %c0_i32_0 = arith.constant 0 : i32
    %c0_i32_1 = arith.constant 0 : i32
    return %arg0, %c0_i32, %c0_i32_0 : i32, i32, i32
  }
}

module attributes {stable_mosaic.version = 11 : i64} {
  func.func @_bn_residual_relu_kernel(%arg0: i32, %arg1: memref<128x128xbf16, #tpu.memory_space<vmem>>, %arg2: memref<128x128xbf16, #tpu.memory_space<vmem>>, %arg3: memref<1x128xf32, #tpu.memory_space<vmem>>, %arg4: memref<1x128xf32, #tpu.memory_space<vmem>>, %arg5: memref<128x128xf32, #tpu.memory_space<vmem>>) attributes {dimension_semantics = [#tpu.dimension_semantics<parallel>], iteration_bounds = array<i64: 4>, scalar_prefetch = 0 : i64, scratch_operands = 0 : i64, tpu.core_type = #tpu.core_type<tc>, window_params = [{transform_indices = @transform_0, window_bounds = array<i64: 128, 128>}, {transform_indices = @transform_1, window_bounds = array<i64: 128, 128>}, {pipeline_mode = #tpu.pipeline_mode<synchronous>, transform_indices = @transform_2, window_bounds = array<i64: 1, 128>}, {pipeline_mode = #tpu.pipeline_mode<synchronous>, transform_indices = @transform_3, window_bounds = array<i64: 1, 128>}, {transform_indices = @transform_4, window_bounds = array<i64: 128, 128>}]} {
    %c0 = arith.constant 0 : index
    %c0_0 = arith.constant 0 : index
    %0 = vector.load %arg1[%c0, %c0_0] : memref<128x128xbf16, #tpu.memory_space<vmem>>, vector<128x128xbf16>
    %1 = arith.extf %0 : vector<128x128xbf16> to vector<128x128xf32>
    %c0_1 = arith.constant 0 : index
    %c0_2 = arith.constant 0 : index
    %2 = vector.load %arg3[%c0_1, %c0_2] : memref<1x128xf32, #tpu.memory_space<vmem>>, vector<1x128xf32>
    %3 = vector.broadcast %2 : vector<1x128xf32> to vector<128x128xf32>
    %4 = arith.mulf %1, %3 : vector<128x128xf32>
    %c0_3 = arith.constant 0 : index
    %c0_4 = arith.constant 0 : index
    %5 = vector.load %arg4[%c0_3, %c0_4] : memref<1x128xf32, #tpu.memory_space<vmem>>, vector<1x128xf32>
    %6 = vector.broadcast %5 : vector<1x128xf32> to vector<128x128xf32>
    %7 = arith.addf %4, %6 : vector<128x128xf32>
    %c0_5 = arith.constant 0 : index
    %c0_6 = arith.constant 0 : index
    %8 = vector.load %arg2[%c0_5, %c0_6] : memref<128x128xbf16, #tpu.memory_space<vmem>>, vector<128x128xbf16>
    %9 = arith.extf %8 : vector<128x128xbf16> to vector<128x128xf32>
    %10 = arith.addf %7, %9 : vector<128x128xf32>
    %cst = arith.constant 0.000000e+00 : f32
    %11 = vector.broadcast %cst : f32 to vector<128x128xf32>
    %12 = arith.maximumf %10, %11 : vector<128x128xf32>
    %c0_7 = arith.constant 0 : index
    %c0_8 = arith.constant 0 : index
    %13 = vector.load %arg5[%c0_7, %c0_8] : memref<128x128xf32, #tpu.memory_space<vmem>>, vector<128x128xf32>
    tpu.vector_store %arg5[%c0_7, %c0_8], %12 {strides = array<i32>} : memref<128x128xf32, #tpu.memory_space<vmem>>, vector<128x128xf32>,
    return
  }
  func.func @transform_0(%arg0: i32) -> (i32, i32) {
    %c0_i32 = arith.constant 0 : i32
    %c0_i32_0 = arith.constant 0 : i32
    return %arg0, %c0_i32 : i32, i32
  }
  func.func @transform_1(%arg0: i32) -> (i32, i32) {
    %c0_i32 = arith.constant 0 : i32
    %c0_i32_0 = arith.constant 0 : i32
    return %arg0, %c0_i32 : i32, i32
  }
  func.func @transform_2(%arg0: i32) -> (i32, i32) {
    %c0_i32 = arith.constant 0 : i32
    %c0_i32_0 = arith.constant 0 : i32
    %c0_i32_1 = arith.constant 0 : i32
    return %c0_i32, %c0_i32_0 : i32, i32
  }
  func.func @transform_3(%arg0: i32) -> (i32, i32) {
    %c0_i32 = arith.constant 0 : i32
    %c0_i32_0 = arith.constant 0 : i32
    %c0_i32_1 = arith.constant 0 : i32
    return %c0_i32, %c0_i32_0 : i32, i32
  }
  func.func @transform_4(%arg0: i32) -> (i32, i32) {
    %c0_i32 = arith.constant 0 : i32
    %c0_i32_0 = arith.constant 0 : i32
    return %arg0, %c0_i32 : i32, i32
  }
}

module attributes {stable_mosaic.version = 11 : i64} {
  func.func @_conv3x3_kernel(%arg0: i32, %arg1: memref<1x16x16x128xbf16, #tpu.memory_space<vmem>>, %arg2: memref<1x128xf32, #tpu.memory_space<vmem>>, %arg3: memref<1x128xf32, #tpu.memory_space<vmem>>, %arg4: memref<3x3x128x128xbf16, #tpu.memory_space<vmem>>, %arg5: memref<1x16x16x128xbf16, #tpu.memory_space<vmem>>, %arg6: memref<1x1x256xf32, #tpu.memory_space<vmem>>) attributes {dimension_semantics = [#tpu.dimension_semantics<parallel>], iteration_bounds = array<i64: 2>, scalar_prefetch = 0 : i64, scratch_operands = 0 : i64, tpu.core_type = #tpu.core_type<tc>, window_params = [{transform_indices = @transform_0, window_bounds = array<i64: 1, 16, 16, 128>}, {pipeline_mode = #tpu.pipeline_mode<synchronous>, transform_indices = @transform_1, window_bounds = array<i64: 1, 128>}, {pipeline_mode = #tpu.pipeline_mode<synchronous>, transform_indices = @transform_2, window_bounds = array<i64: 1, 128>}, {pipeline_mode = #tpu.pipeline_mode<synchronous>, transform_indices = @transform_3, window_bounds = array<i64: 3, 3, 128, 128>}, {transform_indices = @transform_4, window_bounds = array<i64: 1, 16, 16, 128>}, {transform_indices = @transform_5, window_bounds = array<i64: 1, 1, 256>}]} {
    %c0 = arith.constant 0 : index
    %c0_0 = arith.constant 0 : index
    %c0_1 = arith.constant 0 : index
    %c0_2 = arith.constant 0 : index
    %0 = vector.load %arg1[%c0, %c0_0, %c0_1, %c0_2] : memref<1x16x16x128xbf16, #tpu.memory_space<vmem>>, vector<1x16x16x128xbf16>
    %1 = vector.shape_cast %0 : vector<1x16x16x128xbf16> to vector<16x16x128xbf16>
    %2 = arith.extf %1 : vector<16x16x128xbf16> to vector<16x16x128xf32>
    %c0_3 = arith.constant 0 : index
    %c0_4 = arith.constant 0 : index
    %3 = vector.load %arg2[%c0_3, %c0_4] : memref<1x128xf32, #tpu.memory_space<vmem>>, vector<1x128xf32>
    %4 = vector.shape_cast %3 : vector<1x128xf32> to vector<1x1x128xf32>
    %5 = vector.broadcast %4 : vector<1x1x128xf32> to vector<16x16x128xf32>
    %6 = arith.mulf %2, %5 : vector<16x16x128xf32>
    %c0_5 = arith.constant 0 : index
    %c0_6 = arith.constant 0 : index
    %7 = vector.load %arg3[%c0_5, %c0_6] : memref<1x128xf32, #tpu.memory_space<vmem>>, vector<1x128xf32>
    %8 = vector.shape_cast %7 : vector<1x128xf32> to vector<1x1x128xf32>
    %9 = vector.broadcast %8 : vector<1x1x128xf32> to vector<16x16x128xf32>
    %10 = arith.addf %6, %9 : vector<16x16x128xf32>
    %cst = arith.constant 0.000000e+00 : f32
    %11 = vector.broadcast %cst : f32 to vector<16x16x128xf32>
    %12 = arith.maximumf %10, %11 : vector<16x16x128xf32>
    %cst_7 = arith.constant 0.000000e+00 : f32
    %13 = vector.broadcast %cst_7 : f32 to vector<1x16x128xf32>
    %14 = tpu.concatenate %13, %12, %13 in 0 : vector<1x16x128xf32>, vector<16x16x128xf32>, vector<1x16x128xf32> -> vector<18x16x128xf32>
    %cst_8 = arith.constant 0.000000e+00 : f32
    %15 = vector.broadcast %cst_8 : f32 to vector<18x1x128xf32>
    %16 = vector.extract_strided_slice %14 {offsets = [0, 0, 0], sizes = [18, 15, 128], strides = [1, 1, 1]} : vector<18x16x128xf32> to vector<18x15x128xf32>
    %17 = tpu.concatenate %15, %16 in 1 : vector<18x1x128xf32>, vector<18x15x128xf32> -> vector<18x16x128xf32>
    %18 = vector.extract_strided_slice %14 {offsets = [0, 1, 0], sizes = [18, 15, 128], strides = [1, 1, 1]} : vector<18x16x128xf32> to vector<18x15x128xf32>
    %19 = tpu.concatenate %18, %15 in 1 : vector<18x15x128xf32>, vector<18x1x128xf32> -> vector<18x16x128xf32>
    %20 = arith.truncf %17 : vector<18x16x128xf32> to vector<18x16x128xbf16>
    %21 = vector.shape_cast %20 : vector<18x16x128xbf16> to vector<288x128xbf16>
    %22 = arith.truncf %14 : vector<18x16x128xf32> to vector<18x16x128xbf16>
    %23 = vector.shape_cast %22 : vector<18x16x128xbf16> to vector<288x128xbf16>
    %24 = arith.truncf %19 : vector<18x16x128xf32> to vector<18x16x128xbf16>
    %25 = vector.shape_cast %24 : vector<18x16x128xbf16> to vector<288x128xbf16>
    %cst_9 = arith.constant 0.000000e+00 : f32
    %26 = vector.broadcast %cst_9 : f32 to vector<256x128xf32>
    %27 = vector.extract_strided_slice %21 {offsets = [0, 0], sizes = [256, 128], strides = [1, 1]} : vector<288x128xbf16> to vector<256x128xbf16>
    %c0_10 = arith.constant 0 : index
    %c0_11 = arith.constant 0 : index
    %c0_12 = arith.constant 0 : index
    %c0_13 = arith.constant 0 : index
    %28 = vector.load %arg4[%c0_10, %c0_11, %c0_12, %c0_13] : memref<3x3x128x128xbf16, #tpu.memory_space<vmem>>, vector<1x1x128x128xbf16>
    %29 = vector.shape_cast %28 : vector<1x1x128x128xbf16> to vector<128x128xbf16>
    %cst_14 = arith.constant dense<0.000000e+00> : vector<256x128xf32>
    %30 = tpu.matmul %27, %29, %cst_14 {dimension_numbers = #tpu.dot_dimension_numbers<[1], [0], [0], [1], [0, 0, 1, 1], [], []>} : vector<256x128xbf16>, vector<128x128xbf16>, vector<256x128xf32> -> vector<256x128xf32>
    %31 = arith.addf %26, %30 : vector<256x128xf32>
    %32 = vector.extract_strided_slice %23 {offsets = [0, 0], sizes = [256, 128], strides = [1, 1]} : vector<288x128xbf16> to vector<256x128xbf16>
    %c0_15 = arith.constant 0 : index
    %c1 = arith.constant 1 : index
    %c0_16 = arith.constant 0 : index
    %c0_17 = arith.constant 0 : index
    %33 = vector.load %arg4[%c0_15, %c1, %c0_16, %c0_17] : memref<3x3x128x128xbf16, #tpu.memory_space<vmem>>, vector<1x1x128x128xbf16>
    %34 = vector.shape_cast %33 : vector<1x1x128x128xbf16> to vector<128x128xbf16>
    %cst_18 = arith.constant dense<0.000000e+00> : vector<256x128xf32>
    %35 = tpu.matmul %32, %34, %cst_18 {dimension_numbers = #tpu.dot_dimension_numbers<[1], [0], [0], [1], [0, 0, 1, 1], [], []>} : vector<256x128xbf16>, vector<128x128xbf16>, vector<256x128xf32> -> vector<256x128xf32>
    %36 = arith.addf %31, %35 : vector<256x128xf32>
    %37 = vector.extract_strided_slice %25 {offsets = [0, 0], sizes = [256, 128], strides = [1, 1]} : vector<288x128xbf16> to vector<256x128xbf16>
    %c0_19 = arith.constant 0 : index
    %c2 = arith.constant 2 : index
    %c0_20 = arith.constant 0 : index
    %c0_21 = arith.constant 0 : index
    %38 = vector.load %arg4[%c0_19, %c2, %c0_20, %c0_21] : memref<3x3x128x128xbf16, #tpu.memory_space<vmem>>, vector<1x1x128x128xbf16>
    %39 = vector.shape_cast %38 : vector<1x1x128x128xbf16> to vector<128x128xbf16>
    %cst_22 = arith.constant dense<0.000000e+00> : vector<256x128xf32>
    %40 = tpu.matmul %37, %39, %cst_22 {dimension_numbers = #tpu.dot_dimension_numbers<[1], [0], [0], [1], [0, 0, 1, 1], [], []>} : vector<256x128xbf16>, vector<128x128xbf16>, vector<256x128xf32> -> vector<256x128xf32>
    %41 = arith.addf %36, %40 : vector<256x128xf32>
    %42 = vector.extract_strided_slice %21 {offsets = [16, 0], sizes = [256, 128], strides = [1, 1]} : vector<288x128xbf16> to vector<256x128xbf16>
    %c1_23 = arith.constant 1 : index
    %c0_24 = arith.constant 0 : index
    %c0_25 = arith.constant 0 : index
    %c0_26 = arith.constant 0 : index
    %43 = vector.load %arg4[%c1_23, %c0_24, %c0_25, %c0_26] : memref<3x3x128x128xbf16, #tpu.memory_space<vmem>>, vector<1x1x128x128xbf16>
    %44 = vector.shape_cast %43 : vector<1x1x128x128xbf16> to vector<128x128xbf16>
    %cst_27 = arith.constant dense<0.000000e+00> : vector<256x128xf32>
    %45 = tpu.matmul %42, %44, %cst_27 {dimension_numbers = #tpu.dot_dimension_numbers<[1], [0], [0], [1], [0, 0, 1, 1], [], []>} : vector<256x128xbf16>, vector<128x128xbf16>, vector<256x128xf32> -> vector<256x128xf32>
    %46 = arith.addf %41, %45 : vector<256x128xf32>
    %47 = vector.extract_strided_slice %23 {offsets = [16, 0], sizes = [256, 128], strides = [1, 1]} : vector<288x128xbf16> to vector<256x128xbf16>
    %c1_28 = arith.constant 1 : index
    %c1_29 = arith.constant 1 : index
    %c0_30 = arith.constant 0 : index
    %c0_31 = arith.constant 0 : index
    %48 = vector.load %arg4[%c1_28, %c1_29, %c0_30, %c0_31] : memref<3x3x128x128xbf16, #tpu.memory_space<vmem>>, vector<1x1x128x128xbf16>
    %49 = vector.shape_cast %48 : vector<1x1x128x128xbf16> to vector<128x128xbf16>
    %cst_32 = arith.constant dense<0.000000e+00> : vector<256x128xf32>
    %50 = tpu.matmul %47, %49, %cst_32 {dimension_numbers = #tpu.dot_dimension_numbers<[1], [0], [0], [1], [0, 0, 1, 1], [], []>} : vector<256x128xbf16>, vector<128x128xbf16>, vector<256x128xf32> -> vector<256x128xf32>
    %51 = arith.addf %46, %50 : vector<256x128xf32>
    %52 = vector.extract_strided_slice %25 {offsets = [16, 0], sizes = [256, 128], strides = [1, 1]} : vector<288x128xbf16> to vector<256x128xbf16>
    %c1_33 = arith.constant 1 : index
    %c2_34 = arith.constant 2 : index
    %c0_35 = arith.constant 0 : index
    %c0_36 = arith.constant 0 : index
    %53 = vector.load %arg4[%c1_33, %c2_34, %c0_35, %c0_36] : memref<3x3x128x128xbf16, #tpu.memory_space<vmem>>, vector<1x1x128x128xbf16>
    %54 = vector.shape_cast %53 : vector<1x1x128x128xbf16> to vector<128x128xbf16>
    %cst_37 = arith.constant dense<0.000000e+00> : vector<256x128xf32>
    %55 = tpu.matmul %52, %54, %cst_37 {dimension_numbers = #tpu.dot_dimension_numbers<[1], [0], [0], [1], [0, 0, 1, 1], [], []>} : vector<256x128xbf16>, vector<128x128xbf16>, vector<256x128xf32> -> vector<256x128xf32>
    %56 = arith.addf %51, %55 : vector<256x128xf32>
    %57 = vector.extract_strided_slice %21 {offsets = [32, 0], sizes = [256, 128], strides = [1, 1]} : vector<288x128xbf16> to vector<256x128xbf16>
    %c2_38 = arith.constant 2 : index
    %c0_39 = arith.constant 0 : index
    %c0_40 = arith.constant 0 : index
    %c0_41 = arith.constant 0 : index
    %58 = vector.load %arg4[%c2_38, %c0_39, %c0_40, %c0_41] : memref<3x3x128x128xbf16, #tpu.memory_space<vmem>>, vector<1x1x128x128xbf16>
    %59 = vector.shape_cast %58 : vector<1x1x128x128xbf16> to vector<128x128xbf16>
    %cst_42 = arith.constant dense<0.000000e+00> : vector<256x128xf32>
    %60 = tpu.matmul %57, %59, %cst_42 {dimension_numbers = #tpu.dot_dimension_numbers<[1], [0], [0], [1], [0, 0, 1, 1], [], []>} : vector<256x128xbf16>, vector<128x128xbf16>, vector<256x128xf32> -> vector<256x128xf32>
    %61 = arith.addf %56, %60 : vector<256x128xf32>
    %62 = vector.extract_strided_slice %23 {offsets = [32, 0], sizes = [256, 128], strides = [1, 1]} : vector<288x128xbf16> to vector<256x128xbf16>
    %c2_43 = arith.constant 2 : index
    %c1_44 = arith.constant 1 : index
    %c0_45 = arith.constant 0 : index
    %c0_46 = arith.constant 0 : index
    %63 = vector.load %arg4[%c2_43, %c1_44, %c0_45, %c0_46] : memref<3x3x128x128xbf16, #tpu.memory_space<vmem>>, vector<1x1x128x128xbf16>
    %64 = vector.shape_cast %63 : vector<1x1x128x128xbf16> to vector<128x128xbf16>
    %cst_47 = arith.constant dense<0.000000e+00> : vector<256x128xf32>
    %65 = tpu.matmul %62, %64, %cst_47 {dimension_numbers = #tpu.dot_dimension_numbers<[1], [0], [0], [1], [0, 0, 1, 1], [], []>} : vector<256x128xbf16>, vector<128x128xbf16>, vector<256x128xf32> -> vector<256x128xf32>
    %66 = arith.addf %61, %65 : vector<256x128xf32>
    %67 = vector.extract_strided_slice %25 {offsets = [32, 0], sizes = [256, 128], strides = [1, 1]} : vector<288x128xbf16> to vector<256x128xbf16>
    %c2_48 = arith.constant 2 : index
    %c2_49 = arith.constant 2 : index
    %c0_50 = arith.constant 0 : index
    %c0_51 = arith.constant 0 : index
    %68 = vector.load %arg4[%c2_48, %c2_49, %c0_50, %c0_51] : memref<3x3x128x128xbf16, #tpu.memory_space<vmem>>, vector<1x1x128x128xbf16>
    %69 = vector.shape_cast %68 : vector<1x1x128x128xbf16> to vector<128x128xbf16>
    %cst_52 = arith.constant dense<0.000000e+00> : vector<256x128xf32>
    %70 = tpu.matmul %67, %69, %cst_52 {dimension_numbers = #tpu.dot_dimension_numbers<[1], [0], [0], [1], [0, 0, 1, 1], [], []>} : vector<256x128xbf16>, vector<128x128xbf16>, vector<256x128xf32> -> vector<256x128xf32>
    %71 = arith.addf %66, %70 : vector<256x128xf32>
    %72 = vector.shape_cast %71 : vector<256x128xf32> to vector<1x16x16x128xf32>
    %73 = arith.truncf %72 : vector<1x16x16x128xf32> to vector<1x16x16x128xbf16>
    %c0_53 = arith.constant 0 : index
    %c0_54 = arith.constant 0 : index
    %c0_55 = arith.constant 0 : index
    %c0_56 = arith.constant 0 : index
    %74 = vector.load %arg5[%c0_53, %c0_54, %c0_55, %c0_56] : memref<1x16x16x128xbf16, #tpu.memory_space<vmem>>, vector<1x16x16x128xbf16>
    tpu.vector_store %arg5[%c0_53, %c0_54, %c0_55, %c0_56], %73 {strides = array<i32>} : memref<1x16x16x128xbf16, #tpu.memory_space<vmem>>, vector<1x16x16x128xbf16>,
    %cst_57 = arith.constant dense<0.000000e+00> : vector<128xf32>
    %75 = vector.multi_reduction <add>, %71, %cst_57 [0] : vector<256x128xf32> to vector<128xf32>
    %76 = vector.shape_cast %75 : vector<128xf32> to vector<1x128xf32>
    %77 = arith.mulf %71, %71 : vector<256x128xf32>
    %cst_58 = arith.constant dense<0.000000e+00> : vector<128xf32>
    %78 = vector.multi_reduction <add>, %77, %cst_58 [0] : vector<256x128xf32> to vector<128xf32>
    %79 = vector.shape_cast %78 : vector<128xf32> to vector<1x128xf32>
    %80 = tpu.concatenate %76, %79 in 1 : vector<1x128xf32>, vector<1x128xf32> -> vector<1x256xf32>
    %81 = vector.shape_cast %80 : vector<1x256xf32> to vector<1x1x256xf32>
    %c0_59 = arith.constant 0 : index
    %c0_60 = arith.constant 0 : index
    %c0_61 = arith.constant 0 : index
    %82 = vector.load %arg6[%c0_59, %c0_60, %c0_61] : memref<1x1x256xf32, #tpu.memory_space<vmem>>, vector<1x1x256xf32>
    tpu.vector_store %arg6[%c0_59, %c0_60, %c0_61], %81 {strides = array<i32>} : memref<1x1x256xf32, #tpu.memory_space<vmem>>, vector<1x1x256xf32>,
    return
  }
  func.func @transform_0(%arg0: i32) -> (i32, i32, i32, i32) {
    %c0_i32 = arith.constant 0 : i32
    %c0_i32_0 = arith.constant 0 : i32
    %c0_i32_1 = arith.constant 0 : i32
    %c0_i32_2 = arith.constant 0 : i32
    return %arg0, %c0_i32, %c0_i32_0, %c0_i32_1 : i32, i32, i32, i32
  }
  func.func @transform_1(%arg0: i32) -> (i32, i32) {
    %c0_i32 = arith.constant 0 : i32
    %c0_i32_0 = arith.constant 0 : i32
    %c0_i32_1 = arith.constant 0 : i32
    return %c0_i32, %c0_i32_0 : i32, i32
  }
  func.func @transform_2(%arg0: i32) -> (i32, i32) {
    %c0_i32 = arith.constant 0 : i32
    %c0_i32_0 = arith.constant 0 : i32
    %c0_i32_1 = arith.constant 0 : i32
    return %c0_i32, %c0_i32_0 : i32, i32
  }
  func.func @transform_3(%arg0: i32) -> (i32, i32, i32, i32) {
    %c0_i32 = arith.constant 0 : i32
    %c0_i32_0 = arith.constant 0 : i32
    %c0_i32_1 = arith.constant 0 : i32
    %c0_i32_2 = arith.constant 0 : i32
    %c0_i32_3 = arith.constant 0 : i32
    return %c0_i32, %c0_i32_0, %c0_i32_1, %c0_i32_2 : i32, i32, i32, i32
  }
  func.func @transform_4(%arg0: i32) -> (i32, i32, i32, i32) {
    %c0_i32 = arith.constant 0 : i32
    %c0_i32_0 = arith.constant 0 : i32
    %c0_i32_1 = arith.constant 0 : i32
    %c0_i32_2 = arith.constant 0 : i32
    return %arg0, %c0_i32, %c0_i32_0, %c0_i32_1 : i32, i32, i32, i32
  }
  func.func @transform_5(%arg0: i32) -> (i32, i32, i32) {
    %c0_i32 = arith.constant 0 : i32
    %c0_i32_0 = arith.constant 0 : i32
    %c0_i32_1 = arith.constant 0 : i32
    return %arg0, %c0_i32, %c0_i32_0 : i32, i32, i32
  }
}

module attributes {stable_mosaic.version = 11 : i64} {
  func.func @_pointwise_conv_kernel(%arg0: i32, %arg1: memref<128x128xbf16, #tpu.memory_space<vmem>>, %arg2: memref<1x128xf32, #tpu.memory_space<vmem>>, %arg3: memref<1x128xf32, #tpu.memory_space<vmem>>, %arg4: memref<128x128xbf16, #tpu.memory_space<vmem>>, %arg5: memref<128x128xbf16, #tpu.memory_space<vmem>>, %arg6: memref<1x1x256xf32, #tpu.memory_space<vmem>>) attributes {dimension_semantics = [#tpu.dimension_semantics<parallel>], iteration_bounds = array<i64: 4>, scalar_prefetch = 0 : i64, scratch_operands = 0 : i64, tpu.core_type = #tpu.core_type<tc>, window_params = [{transform_indices = @transform_0, window_bounds = array<i64: 128, 128>}, {pipeline_mode = #tpu.pipeline_mode<synchronous>, transform_indices = @transform_1, window_bounds = array<i64: 1, 128>}, {pipeline_mode = #tpu.pipeline_mode<synchronous>, transform_indices = @transform_2, window_bounds = array<i64: 1, 128>}, {pipeline_mode = #tpu.pipeline_mode<synchronous>, transform_indices = @transform_3, window_bounds = array<i64: 128, 128>}, {transform_indices = @transform_4, window_bounds = array<i64: 128, 128>}, {transform_indices = @transform_5, window_bounds = array<i64: 1, 1, 256>}]} {
    %c0 = arith.constant 0 : index
    %c0_0 = arith.constant 0 : index
    %0 = vector.load %arg1[%c0, %c0_0] : memref<128x128xbf16, #tpu.memory_space<vmem>>, vector<128x128xbf16>
    %1 = arith.extf %0 : vector<128x128xbf16> to vector<128x128xf32>
    %c0_1 = arith.constant 0 : index
    %c0_2 = arith.constant 0 : index
    %2 = vector.load %arg2[%c0_1, %c0_2] : memref<1x128xf32, #tpu.memory_space<vmem>>, vector<1x128xf32>
    %3 = vector.broadcast %2 : vector<1x128xf32> to vector<128x128xf32>
    %4 = arith.mulf %1, %3 : vector<128x128xf32>
    %c0_3 = arith.constant 0 : index
    %c0_4 = arith.constant 0 : index
    %5 = vector.load %arg3[%c0_3, %c0_4] : memref<1x128xf32, #tpu.memory_space<vmem>>, vector<1x128xf32>
    %6 = vector.broadcast %5 : vector<1x128xf32> to vector<128x128xf32>
    %7 = arith.addf %4, %6 : vector<128x128xf32>
    %cst = arith.constant 0.000000e+00 : f32
    %8 = vector.broadcast %cst : f32 to vector<128x128xf32>
    %9 = arith.maximumf %7, %8 : vector<128x128xf32>
    %10 = arith.truncf %9 : vector<128x128xf32> to vector<128x128xbf16>
    %c0_5 = arith.constant 0 : index
    %c0_6 = arith.constant 0 : index
    %11 = vector.load %arg4[%c0_5, %c0_6] : memref<128x128xbf16, #tpu.memory_space<vmem>>, vector<128x128xbf16>
    %cst_7 = arith.constant dense<0.000000e+00> : vector<128x128xf32>
    %12 = tpu.matmul %10, %11, %cst_7 {dimension_numbers = #tpu.dot_dimension_numbers<[1], [0], [0], [1], [0, 0, 1, 1], [], []>} : vector<128x128xbf16>, vector<128x128xbf16>, vector<128x128xf32> -> vector<128x128xf32>
    %13 = arith.truncf %12 : vector<128x128xf32> to vector<128x128xbf16>
    %c0_8 = arith.constant 0 : index
    %c0_9 = arith.constant 0 : index
    %14 = vector.load %arg5[%c0_8, %c0_9] : memref<128x128xbf16, #tpu.memory_space<vmem>>, vector<128x128xbf16>
    tpu.vector_store %arg5[%c0_8, %c0_9], %13 {strides = array<i32>} : memref<128x128xbf16, #tpu.memory_space<vmem>>, vector<128x128xbf16>,
    %cst_10 = arith.constant dense<0.000000e+00> : vector<128xf32>
    %15 = vector.multi_reduction <add>, %12, %cst_10 [0] : vector<128x128xf32> to vector<128xf32>
    %16 = vector.shape_cast %15 : vector<128xf32> to vector<1x128xf32>
    %17 = arith.mulf %12, %12 : vector<128x128xf32>
    %cst_11 = arith.constant dense<0.000000e+00> : vector<128xf32>
    %18 = vector.multi_reduction <add>, %17, %cst_11 [0] : vector<128x128xf32> to vector<128xf32>
    %19 = vector.shape_cast %18 : vector<128xf32> to vector<1x128xf32>
    %20 = tpu.concatenate %16, %19 in 1 : vector<1x128xf32>, vector<1x128xf32> -> vector<1x256xf32>
    %21 = vector.shape_cast %20 : vector<1x256xf32> to vector<1x1x256xf32>
    %c0_12 = arith.constant 0 : index
    %c0_13 = arith.constant 0 : index
    %c0_14 = arith.constant 0 : index
    %22 = vector.load %arg6[%c0_12, %c0_13, %c0_14] : memref<1x1x256xf32, #tpu.memory_space<vmem>>, vector<1x1x256xf32>
    tpu.vector_store %arg6[%c0_12, %c0_13, %c0_14], %21 {strides = array<i32>} : memref<1x1x256xf32, #tpu.memory_space<vmem>>, vector<1x1x256xf32>,
    return
  }
  func.func @transform_0(%arg0: i32) -> (i32, i32) {
    %c0_i32 = arith.constant 0 : i32
    %c0_i32_0 = arith.constant 0 : i32
    return %arg0, %c0_i32 : i32, i32
  }
  func.func @transform_1(%arg0: i32) -> (i32, i32) {
    %c0_i32 = arith.constant 0 : i32
    %c0_i32_0 = arith.constant 0 : i32
    %c0_i32_1 = arith.constant 0 : i32
    return %c0_i32, %c0_i32_0 : i32, i32
  }
  func.func @transform_2(%arg0: i32) -> (i32, i32) {
    %c0_i32 = arith.constant 0 : i32
    %c0_i32_0 = arith.constant 0 : i32
    %c0_i32_1 = arith.constant 0 : i32
    return %c0_i32, %c0_i32_0 : i32, i32
  }
  func.func @transform_3(%arg0: i32) -> (i32, i32) {
    %c0_i32 = arith.constant 0 : i32
    %c0_i32_0 = arith.constant 0 : i32
    %c0_i32_1 = arith.constant 0 : i32
    return %c0_i32, %c0_i32_0 : i32, i32
  }
  func.func @transform_4(%arg0: i32) -> (i32, i32) {
    %c0_i32 = arith.constant 0 : i32
    %c0_i32_0 = arith.constant 0 : i32
    return %arg0, %c0_i32 : i32, i32
  }
  func.func @transform_5(%arg0: i32) -> (i32, i32, i32) {
    %c0_i32 = arith.constant 0 : i32
    %c0_i32_0 = arith.constant 0 : i32
    %c0_i32_1 = arith.constant 0 : i32
    return %arg0, %c0_i32, %c0_i32_0 : i32, i32, i32
  }
}

</mosaic_0001>

<bundles_post_ra>
// kernel: bottleneck_forward.7
= control target key start
LH: loop header
LB: loop body
LE: loop exit
PB: predicated region body
PF: predicated region fallthrough
CT: control target
= control target key end

     0   :  { %s583_s15 = smov 0   ;;  %s687_s0 = inlined_call_operand.vmem [shape: bf16[512,128], index: 0, kind: input, shape index: {}]   ;;  %s688_s1 = inlined_call_operand.vmem [shape: bf16[512,128], index: 1, kind: input, shape index: {}]   ;;  %s689_s2 = inlined_call_operand.vmem [shape: f32[1,128], index: 2, kind: input, shape index: {}]   ;;  %s690_s3 = inlined_call_operand.vmem [shape: f32[1,128], index: 3, kind: input, shape index: {}]   ;;  %s691_s4 = inlined_call_operand.vmem [shape: f32[512,128], index: 4, kind: output, shape index: {}]  }
   0x1 LB: > { %s449_s16 = sadd.s32 4294967295, %s556_s15   ;;  %p453_p0 = scmp.ge.s32.totalorder %s556_s15, 1  ;;  %s556_s15 = sphi %s583_s15, %s14_s15  }
   0x2   : > { %p174_p1 = scmp.lt.s32.totalorder %s556_s15, 5 }
   0x4   : > { %p175_p2 = pnand %p453_p0, %p174_p1 }
   0x5   : > { %s454_s17 = sshll.u32 (!%p175_p2), %s449_s16, 4  ;;  %v607_v0 = vld [vmem:[%s689_s2] ss:$0 sm:$0xff] (!%p175_p2) }
   0x6   : > { %178 = sbr.rel (%p175_p2) target bundleno = 48 (0x30), region = 36  ;;  %p206_p3 = scmp.lt.s32.totalorder (!%p175_p2), %s454_s17, 63  ;;  %v618_v11 = vld [vmem:[%s690_s3] ss:$0 sm:$0xff] (!%p175_p2) }
   0xd   : > { %s693_s17 = smov (!%p206_p3, %s454_s17), 63 }
   0xe   : > { %s455_s18 = sshll.u32 %s693_s17, 2  ;;  %s459_s29 = sshll.u32 %s693_s17, 3 }
   0xf   : > { %s597_s21 = scalar_lea.vmem %s687_s0, %s455_s18  ;;  %s602_s24 = scalar_lea.vmem %s688_s1, %s455_s18 }
  0x10   : > { %v465_v1 = vld [vmem:[%s597_s21] sm:$0xff]   ;;  %v528_v3 = vld [vmem:[%s597_s21 + $0x8] sm:$0xff]   ;;  %v529_v9 = vld [vmem:[%s597_s21 + $0x10] sm:$0xff]   ;;  %s638_s6 = scalar_lea.vmem %s691_s4, %s459_s29 }
  0x11   : > { %v497_v2 = vld [vmem:[%s602_s24] sm:$0xff]   ;;  %v466_v4 = vunpack.c.l.bf16 %v465_v1  ;;  %v467_v6 = vunpack.c.h.bf16 %v465_v1  ;;  %v535_v8 = vld [vmem:[%s602_s24 + $0x8] sm:$0xff]   ;;  %v536_v10 = vld [vmem:[%s602_s24 + $0x10] sm:$0xff]   ;;  %v470_v12 = vunpack.c.l.bf16 %v528_v3  ;;  %v471_v14 = vunpack.c.h.bf16 %v528_v3 }
  0x12   : > { %v498_v5 = vunpack.c.l.bf16 %v497_v2  ;;  %v499_v7 = vunpack.c.h.bf16 %v497_v2  ;;  %v502_v13 = vunpack.c.l.bf16 %v535_v8  ;;  %v503_v15 = vunpack.c.h.bf16 %v535_v8  ;;  %v530_v16 = vld [vmem:[%s597_s21 + $0x18] sm:$0xff]   ;;  %v531_v42 = vld [vmem:[%s597_s21 + $0x20] sm:$0xff]   ;;  %v532_v52 = vld [vmem:[%s597_s21 + $0x28] sm:$0xff]  }
  0x13   : > { %v262_v17 = vmul.f32 %v466_v4, %v607_v0  ;;  %v263_v18 = vmul.f32 %v467_v6, %v607_v0  ;;  %v474_v19 = vunpack.c.l.bf16 %v529_v9  ;;  %v506_v20 = vunpack.c.l.bf16 %v536_v10  ;;  %v537_v21 = vld [vmem:[%s602_s24 + $0x18] sm:$0xff]   ;;  %v538_v47 = vld [vmem:[%s602_s24 + $0x20] sm:$0xff]   ;;  %v539_v57 = vld [vmem:[%s602_s24 + $0x28] sm:$0xff]  }
  0x14   : > { %v264_v22 = vmul.f32 %v470_v12, %v607_v0  ;;  %v265_v23 = vmul.f32 %v471_v14, %v607_v0  ;;  %v475_v24 = vunpack.c.h.bf16 %v529_v9  ;;  %v507_v25 = vunpack.c.h.bf16 %v536_v10  ;;  %v533_v62 = vld [vmem:[%s597_s21 + $0x30] sm:$0xff]   ;;  %v534_v14 = vld [vmem:[%s597_s21 + $0x38] sm:$0xff]  }
  0x15   : > { %v285_v26 = vadd.f32 %v618_v11, %v262_v17  ;;  %v286_v27 = vadd.f32 %v618_v11, %v263_v18  ;;  %v266_v28 = vmul.f32 %v474_v19, %v607_v0  ;;  %v478_v29 = vunpack.c.l.bf16 %v530_v16  ;;  %v540_v4 = vld [vmem:[%s602_s24 + $0x30] sm:$0xff]  }
  0x16   : > { %v287_v30 = vadd.f32 %v618_v11, %v264_v22  ;;  %v288_v31 = vadd.f32 %v618_v11, %v265_v23  ;;  %v267_v32 = vmul.f32 %v475_v24, %v607_v0  ;;  %v510_v33 = vunpack.c.l.bf16 %v537_v21  ;;  %v541_v23 = vld [vmem:[%s602_s24 + $0x38] sm:$0xff]  }
  0x17   : > { %v333_v34 = vadd.f32 %v498_v5, %v285_v26  ;;  %v334_v35 = vadd.f32 %v499_v7, %v286_v27  ;;  %v289_v36 = vadd.f32 %v618_v11, %v266_v28  ;;  %v268_v37 = vmul.f32 %v478_v29, %v607_v0 }
  0x18   : > { %v335_v38 = vadd.f32 %v502_v13, %v287_v30  ;;  %v336_v39 = vadd.f32 %v503_v15, %v288_v31  ;;  %v290_v40 = vadd.f32 %v618_v11, %v267_v32  ;;  %v479_v41 = vunpack.c.h.bf16 %v530_v16 }
  0x19   : > { %v349_v43 = vmax.f32 %v333_v34, 0.0  ;;  %v350_v44 = vmax.f32 %v334_v35, 0.0  ;;  %v337_v45 = vadd.f32 %v506_v20, %v289_v36  ;;  %v291_v46 = vadd.f32 %v618_v11, %v268_v37 }
  0x1a   : > { %v351_v48 = vmax.f32 %v335_v38, 0.0  ;;  %v352_v49 = vmax.f32 %v336_v39, 0.0  ;;  %v338_v50 = vadd.f32 %v507_v25, %v290_v40  ;;  %v269_v51 = vmul.f32 %v479_v41, %v607_v0 }
  0x1b   : > { %365 = vst [vmem:[%s638_s6] sm:$0xff] %v349_v43  ;;  %366 = vst [vmem:[%s638_s6 + $0x8] sm:$0xff] %v350_v44  ;;  %v353_v53 = vmax.f32 %v337_v45, 0.0  ;;  %v339_v54 = vadd.f32 %v510_v33, %v291_v46  ;;  %v511_v55 = vunpack.c.h.bf16 %v537_v21  ;;  %v482_v56 = vunpack.c.l.bf16 %v531_v42 }
  0x1c   : > { %367 = vst [vmem:[%s638_s6 + $0x10] sm:$0xff] %v351_v48  ;;  %368 = vst [vmem:[%s638_s6 + $0x18] sm:$0xff] %v352_v49  ;;  %v354_v58 = vmax.f32 %v338_v50, 0.0  ;;  %v292_v59 = vadd.f32 %v618_v11, %v269_v51  ;;  %v514_v60 = vunpack.c.l.bf16 %v538_v47  ;;  %v483_v61 = vunpack.c.h.bf16 %v531_v42 }
  0x1d   : > { %369 = vst [vmem:[%s638_s6 + $0x20] sm:$0xff] %v353_v53  ;;  %v355_v63 = vmax.f32 %v339_v54, 0.0  ;;  %v270_v1 = vmul.f32 %v482_v56, %v607_v0  ;;  %v515_v2 = vunpack.c.h.bf16 %v538_v47  ;;  %v486_v3 = vunpack.c.l.bf16 %v532_v52 }
  0x1e   : > { %370 = vst [vmem:[%s638_s6 + $0x28] sm:$0xff] %v354_v58  ;;  %v340_v5 = vadd.f32 %v511_v55, %v292_v59  ;;  %v271_v6 = vmul.f32 %v483_v61, %v607_v0  ;;  %v518_v7 = vunpack.c.l.bf16 %v539_v57  ;;  %v487_v8 = vunpack.c.h.bf16 %v532_v52 }
  0x1f   : > { %371 = vst [vmem:[%s638_s6 + $0x30] sm:$0xff] %v355_v63  ;;  %v293_v9 = vadd.f32 %v618_v11, %v270_v1  ;;  %v272_v10 = vmul.f32 %v486_v3, %v607_v0  ;;  %v519_v12 = vunpack.c.h.bf16 %v539_v57  ;;  %v490_v13 = vunpack.c.l.bf16 %v533_v62 }
  0x20   : > { %v356_v15 = vmax.f32 %v340_v5, 0.0  ;;  %v294_v16 = vadd.f32 %v618_v11, %v271_v6  ;;  %v273_v17 = vmul.f32 %v487_v8, %v607_v0  ;;  %v522_v18 = vunpack.c.l.bf16 %v540_v4 }
  0x21   : > { %v341_v19 = vadd.f32 %v514_v60, %v293_v9  ;;  %v295_v20 = vadd.f32 %v618_v11, %v272_v10  ;;  %v274_v21 = vmul.f32 %v490_v13, %v607_v0  ;;  %v491_v22 = vunpack.c.h.bf16 %v533_v62 }
  0x22   : > { %372 = vst [vmem:[%s638_s6 + $0x38] sm:$0xff] %v356_v15  ;;  %v342_v24 = vadd.f32 %v515_v2, %v294_v16  ;;  %v296_v25 = vadd.f32 %v618_v11, %v273_v17  ;;  %v523_v26 = vunpack.c.h.bf16 %v540_v4  ;;  %v494_v27 = vunpack.c.l.bf16 %v534_v14 }
  0x23   : > { %v357_v28 = vmax.f32 %v341_v19, 0.0  ;;  %v343_v29 = vadd.f32 %v518_v7, %v295_v20  ;;  %v297_v30 = vadd.f32 %v618_v11, %v274_v21  ;;  %v275_v31 = vmul.f32 %v491_v22, %v607_v0 }
  0x24   : > { %v358_v32 = vmax.f32 %v342_v24, 0.0  ;;  %v344_v33 = vadd.f32 %v519_v12, %v296_v25  ;;  %v276_v34 = vmul.f32 %v494_v27, %v607_v0  ;;  %v526_v35 = vunpack.c.l.bf16 %v541_v23 }
  0x25   : > { %373 = vst [vmem:[%s638_s6 + $0x40] sm:$0xff] %v357_v28  ;;  %v359_v36 = vmax.f32 %v343_v29, 0.0  ;;  %v345_v37 = vadd.f32 %v522_v18, %v297_v30  ;;  %v298_v38 = vadd.f32 %v618_v11, %v275_v31  ;;  %v495_v39 = vunpack.c.h.bf16 %v534_v14 }
  0x26   : > { %374 = vst [vmem:[%s638_s6 + $0x48] sm:$0xff] %v358_v32  ;;  %v360_v40 = vmax.f32 %v344_v33, 0.0  ;;  %v299_v41 = vadd.f32 %v618_v11, %v276_v34  ;;  %v527_v45 = vunpack.c.h.bf16 %v541_v23 }
  0x27   : > { %375 = vst [vmem:[%s638_s6 + $0x50] sm:$0xff] %v359_v36  ;;  %v361_v42 = vmax.f32 %v345_v37, 0.0  ;;  %v346_v43 = vadd.f32 %v523_v26, %v298_v38  ;;  %v277_v44 = vmul.f32 %v495_v39, %v607_v0 }
  0x28   : > { %376 = vst [vmem:[%s638_s6 + $0x58] sm:$0xff] %v360_v40  ;;  %v347_v46 = vadd.f32 %v526_v35, %v299_v41 }
  0x29   : > { %377 = vst [vmem:[%s638_s6 + $0x60] sm:$0xff] %v361_v42  ;;  %v362_v47 = vmax.f32 %v346_v43, 0.0  ;;  %v300_v48 = vadd.f32 %v618_v11, %v277_v44 }
  0x2a   : > { %v363_v49 = vmax.f32 %v347_v46, 0.0 }
  0x2b   : > { %378 = vst [vmem:[%s638_s6 + $0x68] sm:$0xff] %v362_v47  ;;  %v348_v50 = vadd.f32 %v527_v45, %v300_v48 }
  0x2c   : > { %379 = vst [vmem:[%s638_s6 + $0x70] sm:$0xff] %v363_v49 }
  0x2d   : > { %v364_v51 = vmax.f32 %v348_v50, 0.0 }
  0x2f   : > { %380 = vst [vmem:[%s638_s6 + $0x78] sm:$0xff] %v364_v51 }
  0x30 PF: > { %s14_s15 = sadd.s32 1, %s556_s15  }
  0x31   : > { %p11_p4 = scmp.ge.s32.totalorder %s14_s15, 6  }
  0x33   :  { %13 = sbr.rel (!%p11_p4) target bundleno = 1 (0x1), region = 69 }

// kernel: bottleneck_forward.6
= control target key start
LH: loop header
LB: loop body
LE: loop exit
PB: predicated region body
PF: predicated region fallthrough
CT: control target
= control target key end

     0   :  { %s1011_s18 = smov 0   ;;  %s1129_s0 = inlined_call_operand.vmem [shape: bf16[512,128], index: 0, kind: input, shape index: {}]   ;;  %s1130_s1 = inlined_call_operand.vmem [shape: f32[1,128], index: 1, kind: input, shape index: {}]   ;;  %s1131_s2 = inlined_call_operand.vmem [shape: f32[1,128], index: 2, kind: input, shape index: {}]   ;;  %s1132_s3 = inlined_call_operand.vmem [shape: bf16[128,128], index: 3, kind: input, shape index: {}]   ;;  %s1133_s4 = inlined_call_operand.vmem [shape: bf16[512,128], index: 4, kind: output, shape index: {0}]   ;;  %s1134_s5 = inlined_call_operand.vmem [shape: f32[4,1,256], index: 5, kind: output, shape index: {1}]  }
   0x1 LB: > { %s1017_s19 = sadd.s32 4294967295, %s978_s18   ;;  %p755_p0 = scmp.ge.s32.totalorder %s978_s18, 1  ;;  %s978_s18 = sphi %s1011_s18, %s16_s18  }
   0x2   : > { %p191_p1 = scmp.lt.s32.totalorder %s978_s18, 5 }
   0x4   : > { %p192_p2 = pnand %p755_p0, %p191_p1 }
   0x5   : > { %v964_v0 = vld [vmem:[%s1132_s3] sm:$0xff] (!%p192_p2)   ;;  %s756_s22 = sshll.u32 (!%p192_p2), %s1017_s19, 4  ;;  %v965_v1 = vld [vmem:[%s1132_s3 + $0x8] sm:$0xff] (!%p192_p2)   ;;  %v966_v2 = vld [vmem:[%s1132_s3 + $0x10] sm:$0xff] (!%p192_p2)   ;;  %p235_p4 = scmp.lt.s32.totalorder (!%p192_p2), %s1017_s19, 3 }
   0x6   : > { %195 = sbr.rel (%p192_p2) target bundleno = 305 (0x131), region = 36  ;;  %p224_p3 = scmp.lt.s32.totalorder (!%p192_p2), %s756_s22, 63  ;;  %907 = vmatprep.subr.bf16.mxu0 (!%p192_p2), %v964_v0  ;;  %939 = vmatprep.subr.bf16.mxu1 (!%p192_p2), %v964_v0  ;;  %v967_v3 = vld [vmem:[%s1132_s3 + $0x18] sm:$0xff] (!%p192_p2)   ;;  %v1048_v5 = vld [vmem:[%s1130_s1] ss:$0 sm:$0xff] (!%p192_p2)  ;;  %v969_v28 = vld [vmem:[%s1132_s3 + $0x28] sm:$0xff] (!%p192_p2)  }
   0x7   : > { %908 = vmatpush3.bf16.msra.mxu0 (!%p192_p2), %v964_v0  ;;  %947 = vmatpush3.bf16.msra.mxu1 (!%p192_p2), %v964_v0  ;;  %v1055_v10 = vld [vmem:[%s1131_s2] ss:$0 sm:$0xff] (!%p192_p2)  ;;  %v970_v44 = vld [vmem:[%s1132_s3 + $0x30] sm:$0xff] (!%p192_p2)   ;;  %v971_v61 = vld [vmem:[%s1132_s3 + $0x38] sm:$0xff] (!%p192_p2)  }
   0x8   : > { %909 = vmatprep.subr.bf16.mxu0 (!%p192_p2), %v965_v1  ;;  %940 = vmatprep.subr.bf16.mxu1 (!%p192_p2), %v965_v1  ;;  %v968_v16 = vld [vmem:[%s1132_s3 + $0x20] sm:$0xff] (!%p192_p2)  }
   0xb   : > { %910 = vmatpush3.bf16.msra.mxu0 (!%p192_p2), %v965_v1  ;;  %948 = vmatpush3.bf16.msra.mxu1 (!%p192_p2), %v965_v1 }
   0xc   : > { %911 = vmatprep.subr.bf16.mxu0 (!%p192_p2), %v966_v2  ;;  %941 = vmatprep.subr.bf16.mxu1 (!%p192_p2), %v966_v2 }
   0xd   : > { %s1136_s22 = smov (!%p224_p3, %s756_s22), 63  ;;  %s1138_s19 = smov (!%p235_p4, %s1017_s19), 3 }
   0xe   : > { %s757_s27 = sshll.u32 %s1136_s22, 2  ;;  %s760_s22 = sshll.u32 %s1138_s19, 1 }
   0xf   : > { %s1039_s30 = scalar_lea.vmem %s1129_s0, %s757_s27  ;;  %912 = vmatpush3.bf16.msra.mxu0 %v966_v2  ;;  %949 = vmatpush3.bf16.msra.mxu1 %v966_v2  ;;  %s1111_s25 = scalar_lea.vmem %s1133_s4, %s757_s27 }
  0x10   : > { %v806_v4 = vld [vmem:[%s1039_s30] sm:$0xff]   ;;  %v877_v8 = vld [vmem:[%s1039_s30 + $0x8] sm:$0xff]   ;;  %v878_v9 = vld [vmem:[%s1039_s30 + $0x10] sm:$0xff]   ;;  %913 = vmatprep.subr.bf16.mxu0 %v967_v3  ;;  %942 = vmatprep.subr.bf16.mxu1 %v967_v3  ;;  %s238_s28 = scalar_lea.vmem %s1134_s5, %s760_s22 }
  0x11   : > { %v807_v6 = vunpack.c.l.bf16 %v806_v4  ;;  %v808_v7 = vunpack.c.h.bf16 %v806_v4  ;;  %v811_v11 = vunpack.c.l.bf16 %v877_v8  ;;  %v812_v14 = vunpack.c.h.bf16 %v877_v8  ;;  %v880_v15 = vld [vmem:[%s1039_s30 + $0x20] sm:$0xff]   ;;  %v879_v22 = vld [vmem:[%s1039_s30 + $0x18] sm:$0xff]   ;;  %v881_v27 = vld [vmem:[%s1039_s30 + $0x28] sm:$0xff]  }
  0x12   : > { %v815_v17 = vunpack.c.l.bf16 %v878_v9  ;;  %v816_v21 = vunpack.c.h.bf16 %v878_v9  ;;  %v823_v23 = vunpack.c.l.bf16 %v880_v15  ;;  %v882_v30 = vld [vmem:[%s1039_s30 + $0x30] sm:$0xff]   ;;  %v819_v32 = vunpack.c.l.bf16 %v879_v22  ;;  %v883_v39 = vld [vmem:[%s1039_s30 + $0x38] sm:$0xff]  }
  0x13   : > { %v279_v12 = vmul.f32 %v807_v6, %v1048_v5  ;;  %v280_v13 = vmul.f32 %v808_v7, %v1048_v5  ;;  %v281_v20 = vmul.f32 %v811_v11, %v1048_v5  ;;  %914 = vmatpush3.bf16.msra.mxu0 %v967_v3  ;;  %950 = vmatpush3.bf16.msra.mxu1 %v967_v3  ;;  %v820_v33 = vunpack.c.h.bf16 %v879_v22 }
  0x14   : > { %v282_v26 = vmul.f32 %v812_v14, %v1048_v5  ;;  %915 = vmatprep.subr.bf16.mxu0 %v968_v16  ;;  %943 = vmatprep.subr.bf16.mxu1 %v968_v16  ;;  %v283_v29 = vmul.f32 %v815_v17, %v1048_v5  ;;  %v824_v34 = vunpack.c.h.bf16 %v880_v15  ;;  %v284_v36 = vmul.f32 %v816_v21, %v1048_v5 }
  0x15   : > { %v302_v18 = vadd.f32 %v1055_v10, %v279_v12  ;;  %v303_v19 = vadd.f32 %v1055_v10, %v280_v13  ;;  %v304_v35 = vadd.f32 %v1055_v10, %v281_v20  ;;  %v287_v37 = vmul.f32 %v823_v23, %v1048_v5 }
  0x16   : > { %v827_v38 = vunpack.c.l.bf16 %v881_v27  ;;  %v305_v40 = vadd.f32 %v1055_v10, %v282_v26  ;;  %v288_v41 = vmul.f32 %v824_v34, %v1048_v5  ;;  %v828_v42 = vunpack.c.h.bf16 %v881_v27 }
  0x17   : > { %v318_v24 = vmax.f32 %v302_v18, 0.0  ;;  %v319_v25 = vmax.f32 %v303_v19, 0.0  ;;  %916 = vmatpush3.bf16.msra.mxu0 %v968_v16  ;;  %951 = vmatpush3.bf16.msra.mxu1 %v968_v16  ;;  %v831_v43 = vunpack.c.l.bf16 %v882_v30  ;;  %v306_v45 = vadd.f32 %v1055_v10, %v283_v29 }
  0x18   : > { %917 = vmatprep.subr.bf16.mxu0 %v969_v28  ;;  %v310_v46 = vadd.f32 %v1055_v10, %v287_v37  ;;  %v289_v47 = vmul.f32 %v827_v38, %v1048_v5  ;;  %v832_v48 = vunpack.c.h.bf16 %v882_v30  ;;  %944 = vmatprep.subr.bf16.mxu1 %v969_v28  ;;  %v311_v49 = vadd.f32 %v1055_v10, %v288_v41 }
  0x19   : > { %v334_v31 = vpack.c.bf16 %v319_v25, %v318_v24  ;;  %v290_v50 = vmul.f32 %v828_v42, %v1048_v5  ;;  %v291_v51 = vmul.f32 %v831_v43, %v1048_v5  ;;  %v835_v52 = vunpack.c.l.bf16 %v883_v39 }
  0x1a   : > { %v326_v53 = vmax.f32 %v310_v46, 0.0  ;;  %v312_v54 = vadd.f32 %v1055_v10, %v289_v47  ;;  %v292_v55 = vmul.f32 %v832_v48, %v1048_v5  ;;  %v836_v56 = vunpack.c.h.bf16 %v883_v39 }
  0x1b   : > { %923 = vmatprep.mubr.bf16.mxu0 %v334_v31  ;;  %918 = vmatpush3.bf16.msra.mxu0 %v969_v28  ;;  %v307_v57 = vadd.f32 %v1055_v10, %v284_v36  ;;  %v327_v58 = vmax.f32 %v311_v49, 0.0  ;;  %v313_v59 = vadd.f32 %v1055_v10, %v290_v50  ;;  %v314_v60 = vadd.f32 %v1055_v10, %v291_v51 }
  0x1c   : > { %952 = vmatpush3.bf16.msra.mxu1 %v969_v28  ;;  %919 = vmatprep.subr.bf16.mxu0 %v970_v44  ;;  %v285_v62 = vmul.f32 %v819_v32, %v1048_v5  ;;  %v315_v63 = vadd.f32 %v1055_v10, %v292_v55  ;;  %v320_v0 = vmax.f32 %v304_v35, 0.0  ;;  %v321_v1 = vmax.f32 %v305_v40, 0.0 }
  0x1d   : > { %945 = vmatprep.subr.bf16.mxu1 %v970_v44  ;;  %v286_v2 = vmul.f32 %v820_v33, %v1048_v5  ;;  %v338_v3 = vpack.c.bf16 %v327_v58, %v326_v53  ;;  %v328_v4 = vmax.f32 %v312_v54, 0.0  ;;  %v329_v6 = vmax.f32 %v313_v59, 0.0 }
  0x1e   : > { %v293_v7 = vmul.f32 %v835_v52, %v1048_v5  ;;  %v294_v8 = vmul.f32 %v836_v56, %v1048_v5  ;;  %v322_v9 = vmax.f32 %v306_v45, 0.0  ;;  %v323_v11 = vmax.f32 %v307_v57, 0.0 }
  0x1f   : > { %920 = vmatpush3.bf16.msra.mxu0 %v970_v44  ;;  %v330_v12 = vmax.f32 %v314_v60, 0.0  ;;  %v331_v13 = vmax.f32 %v315_v63, 0.0  ;;  %v308_v14 = vadd.f32 %v1055_v10, %v285_v62  ;;  %v309_v15 = vadd.f32 %v1055_v10, %v286_v2  ;;  %931 = vmatprep.mubr.bf16.mxu1 %v338_v3 }
  0x20   : > { %953 = vmatpush3.bf16.msra.mxu1 %v970_v44  ;;  %921 = vmatprep.subr.bf16.mxu0 %v971_v61  ;;  %v335_v16 = vpack.c.bf16 %v321_v1, %v320_v0  ;;  %v339_v17 = vpack.c.bf16 %v329_v6, %v328_v4  ;;  %v316_v18 = vadd.f32 %v1055_v10, %v293_v7 }
  0x21   : > { %946 = vmatprep.subr.bf16.mxu1 %v971_v61  ;;  %v317_v19 = vadd.f32 %v1055_v10, %v294_v8  ;;  %v336_v5 = vpack.c.bf16 %v323_v11, %v322_v9  ;;  %v340_v20 = vpack.c.bf16 %v331_v13, %v330_v12  ;;  %v324_v21 = vmax.f32 %v308_v14, 0.0 }
  0x22   : > { %v325_v22 = vmax.f32 %v309_v15, 0.0  ;;  %v332_v23 = vmax.f32 %v316_v18, 0.0 }
  0x23   : > { %922 = vmatpush3.bf16.msra.mxu0 %v971_v61  ;;  %v333_v24 = vmax.f32 %v317_v19, 0.0 }
  0x24   : > { %954 = vmatpush3.bf16.msra.mxu1 %v971_v61  ;;  %v337_v25 = vpack.c.bf16 %v325_v22, %v324_v21 }
  0x25   : > { %v341_v26 = vpack.c.bf16 %v333_v24, %v332_v23 }
  0x26   : > { %924 = vmatmul.mubr.bf16.vlgmr.msra.gmra.mrb[0].mxu0 %v335_v16 }
  0x27   : > { %932 = vmatmul.mubr.bf16.vlgmr.msra.gmra.mrb[0].mxu1 %v339_v17  ;;  %927 = vmatprep.mubr.bf16.mxu0 %v336_v5 }
  0x28   : > { %935 = vmatprep.mubr.bf16.mxu1 %v340_v20 }
  0x2e   : > { %928 = vmatmul.mubr.bf16.gmra.mrb[4].mxu0 %v337_v25 }
  0x2f   : > { %936 = vmatmul.mubr.bf16.gmra.mrb[4].mxu1 %v341_v26 }
  0xf9   : > { %v925_v27 = vpop.f32.mrb[0].mxu0 }
  0xfa   : > { %v933_v28 = vpop.f32.mrb[0].mxu1  ;;  %v440_v10 = vpop.f32.mrb[1].mxu0  ;;  %v606_v41 = vmul.f32 %v925_v27, %v925_v27 }
  0xfb   : > { %v472_v29 = vpop.f32.mrb[1].mxu1  ;;  %v926_v30 = vpop.f32.mrb[2].mxu0  ;;  %v604_v32 = vmul.f32 %v440_v10, %v440_v10  ;;  %v614_v15 = vmul.f32 %v933_v28, %v933_v28 }
  0xfc   : > { %v934_v31 = vpop.f32.mrb[2].mxu1  ;;  %v845_v33 = vpack.c.bf16 %v926_v30, %v925_v27  ;;  %v443_v34 = vpop.f32.mrb[3].mxu0  ;;  %v607_v44 = vmul.f32 %v926_v30, %v926_v30  ;;  %v612_v8 = vmul.f32 %v472_v29, %v472_v29 }
  0xfd   : > { %v865_v35 = vpack.c.bf16 %v934_v31, %v933_v28  ;;  %v475_v36 = vpop.f32.mrb[3].mxu1  ;;  %v840_v37 = vpack.c.bf16 %v443_v34, %v440_v10  ;;  %v583_v38 = vadd.f32 %v443_v34, %v440_v10  ;;  %v605_v39 = vmul.f32 %v443_v34, %v443_v34 }
  0xfe   : > { %v860_v40 = vpack.c.bf16 %v475_v36, %v472_v29  ;;  %884 = vst [vmem:[%s1111_s25 + $0x8] sm:$0xff] %v845_v33   ;;  %v613_v14 = vmul.f32 %v475_v36, %v475_v36  ;;  %v615_v18 = vmul.f32 %v934_v31, %v934_v31 }
  0xff   : > { %888 = vst [vmem:[%s1111_s25 + $0x28] sm:$0xff] %v865_v35   ;;  %841 = vst [vmem:[%s1111_s25] sm:$0xff] %v840_v37   ;;  %v584_v42 = vadd.f32 %v925_v27, %v583_v38  ;;  %v620_v43 = vadd.f32 %v605_v39, %v604_v32  ;;  %v980_v37 = vmov 1966171168   ;;  %v647_v39 = vlaneseq }
 0x100   : > { %887 = vst [vmem:[%s1111_s25 + $0x20] sm:$0xff] %v860_v40   ;;  %v645_v38 = vunpack.c.l.s4 %v980_v37 }
 0x101   : > { %v621_v45 = vadd.f32 %v620_v43, %v606_v41  ;;  %v929_v46 = vpop.f32.mrb[4].mxu0  ;;  %v585_v47 = vadd.f32 %v926_v30, %v584_v42  ;;  %vm661_vm0 = vcmp.lt.s32.totalorder %v647_v39, 256 }
 0x102   : > { %v937_v48 = vpop.f32.mrb[4].mxu1  ;;  %v456_v49 = vpop.f32.mrb[5].mxu0  ;;  %v610_v1 = vmul.f32 %v929_v46, %v929_v46 }
 0x103   : > { %v488_v50 = vpop.f32.mrb[5].mxu1  ;;  %v586_v51 = vadd.f32 %v585_v47, %v456_v49  ;;  %v608_v52 = vmul.f32 %v456_v49, %v456_v49  ;;  %v622_v53 = vadd.f32 %v621_v45, %v607_v44  ;;  %v930_v54 = vpop.f32.mrb[6].mxu0  ;;  %v618_v26 = vmul.f32 %v937_v48, %v937_v48 }
 0x104   : > { %v938_v55 = vpop.f32.mrb[6].mxu1  ;;  %v855_v56 = vpack.c.bf16 %v930_v54, %v929_v46  ;;  %v459_v57 = vpop.f32.mrb[7].mxu0  ;;  %v611_v4 = vmul.f32 %v930_v54, %v930_v54  ;;  %v616_v20 = vmul.f32 %v488_v50, %v488_v50  ;;  %v646_v44 = vunpack.c.0.s8 %v645_v38 }
 0x105   : > { %v875_v58 = vpack.c.bf16 %v938_v55, %v937_v48  ;;  %v491_v59 = vpop.f32.mrb[7].mxu1  ;;  %v623_v60 = vadd.f32 %v622_v53, %v608_v52  ;;  %v850_v61 = vpack.c.bf16 %v459_v57, %v456_v49  ;;  %v587_v62 = vadd.f32 %v586_v51, %v459_v57 }
 0x106   : > { %v609_v63 = vmul.f32 %v459_v57, %v459_v57  ;;  %886 = vst [vmem:[%s1111_s25 + $0x18] sm:$0xff] %v855_v56   ;;  %v870_v0 = vpack.c.bf16 %v491_v59, %v488_v50  ;;  %v617_v25 = vmul.f32 %v491_v59, %v491_v59  ;;  %v648_v45 = vshrl.u32 %v647_v39, 7 }
 0x107   : > { %890 = vst [vmem:[%s1111_s25 + $0x38] sm:$0xff] %v875_v58   ;;  %885 = vst [vmem:[%s1111_s25 + $0x10] sm:$0xff] %v850_v61   ;;  %v588_v2 = vadd.f32 %v929_v46, %v587_v62 }
 0x108   : > { %v624_v3 = vadd.f32 %v623_v60, %v609_v63  ;;  %889 = vst [vmem:[%s1111_s25 + $0x30] sm:$0xff] %v870_v0   ;;  %v649_v49 = vsub.s32 %v646_v44, %v648_v45 }
 0x109   : > { %v589_v7 = vadd.f32 %v930_v54, %v588_v2 }
 0x10a   : > { %v625_v6 = vadd.f32 %v624_v3, %v610_v1 }
 0x10b   : > { %v590_v9 = vadd.f32 %v589_v7, %v472_v29  ;;  %v619_v29 = vmul.f32 %v938_v55, %v938_v55 }
 0x10c   : > { %v626_v11 = vadd.f32 %v625_v6, %v611_v4 }
 0x10d   : > { %v591_v13 = vadd.f32 %v590_v9, %v475_v36 }
 0x10e   : > { %v627_v12 = vadd.f32 %v626_v11, %v612_v8 }
 0x10f   : > { %v592_v16 = vadd.f32 %v933_v28, %v591_v13 }
 0x110   : > { %v628_v17 = vadd.f32 %v627_v12, %v613_v14 }
 0x111   : > { %v593_v5 = vadd.f32 %v934_v31, %v592_v16 }
 0x112   : > { %v629_v19 = vadd.f32 %v628_v17, %v614_v15 }
 0x113   : > { %v594_v21 = vadd.f32 %v593_v5, %v488_v50 }
 0x114   : > { %v630_v22 = vadd.f32 %v629_v19, %v615_v18 }
 0x115   : > { %v595_v24 = vadd.f32 %v594_v21, %v491_v59 }
 0x116   : > { %v631_v23 = vadd.f32 %v630_v22, %v616_v20 }
 0x117   : > { %v596_v27 = vadd.f32 %v937_v48, %v595_v24 }
 0x118   : > { %v632_v10 = vadd.f32 %v631_v23, %v617_v25 }
 0x119   : > { %v597_v30 = vadd.f32 %v938_v55, %v596_v27 }
 0x11a   : > { %v633_v32 = vadd.f32 %v632_v10, %v618_v26 }
 0x11b   : > { %v598_v33 = vrot.slane %v597_v30, 4 }
 0x11c   : > { %v634_v28 = vadd.f32 %v633_v32, %v619_v29 }
 0x11d   : > { %v599_v34 = vadd.f32 %v598_v33, %v597_v30 }
 0x11e   : > { %v635_v35 = vrot.slane %v634_v28, 4 }
 0x11f   : > { %v600_v36 = vrot.slane %v599_v34, 2 }
 0x120   : > { %v636_v31 = vadd.f32 %v635_v35, %v634_v28 }
 0x121   : > { %v601_v40 = vadd.f32 %v600_v36, %v599_v34 }
 0x122   : > { %v637_v41 = vrot.slane %v636_v31, 2 }
 0x123   : > { %v602_v42 = vrot.slane %v601_v40, 1 }
 0x124   : > { %v638_v43 = vadd.f32 %v637_v41, %v636_v31 }
 0x125   : > { %v603_v47 = vadd.f32 %v602_v42, %v601_v40 }
 0x126   : > { %v639_v46 = vrot.slane %v638_v43, 1 }
 0x128   : > { %v640_v48 = vadd.f32 %v639_v46, %v638_v43 }
 0x12a   : > { %v643_v50 = vcombine.low %v603_v47, %v640_v48 }
 0x12c   : > { %v650_v51 = vrot.slane %v643_v50, %v649_v49 }
 0x12e   : > { %v657_v52 = vrot.slane %v650_v51, %v649_v49 }
 0x130   : > { %663 = vst.msk [vmem:[%s238_s28] sm:$0x3] %vm661_vm0, %v657_v52 }
 0x131 PF: > { %s16_s18 = sadd.s32 1, %s978_s18  }
 0x132   : > { %p13_p5 = scmp.ge.s32.totalorder %s16_s18, 6  }
 0x134   :  { %15 = sbr.rel (!%p13_p5) target bundleno = 1 (0x1), region = 78 }

// kernel: bottleneck_forward.4
= control target key start
LH: loop header
LB: loop body
LE: loop exit
PB: predicated region body
PF: predicated region fallthrough
CT: control target
= control target key end

     0   :  { %s948_s18 = smov 0   ;;  %s1024_s0 = inlined_call_operand.vmem [shape: bf16[512,128], index: 0, kind: input, shape index: {}]   ;;  %s1025_s1 = inlined_call_operand.vmem [shape: f32[1,128], index: 1, kind: input, shape index: {}, may-alias: {1,2}]   ;;  %s1026_s2 = inlined_call_operand.vmem [shape: f32[1,128], index: 2, kind: input, shape index: {}, may-alias: {1,2}]   ;;  %s1027_s3 = inlined_call_operand.vmem [shape: bf16[128,128], index: 3, kind: input, shape index: {}]   ;;  %s1028_s4 = inlined_call_operand.vmem [shape: bf16[512,128], index: 4, kind: output, shape index: {0}]   ;;  %s1029_s5 = inlined_call_operand.vmem [shape: f32[4,1,256], index: 5, kind: output, shape index: {1}]  }
   0x1 LB: > { %s954_s1 = sadd.s32 4294967295, %s915_s18   ;;  %p717_p0 = scmp.ge.s32.totalorder %s915_s18, 1  ;;  %s915_s18 = sphi %s948_s18, %s16_s18  }
   0x2   : > { %p191_p1 = scmp.lt.s32.totalorder %s915_s18, 5 }
   0x4   : > { %p192_p2 = pnand %p717_p0, %p191_p1 }
   0x5   : > { %v893_v0 = vld [vmem:[%s1027_s3] sm:$0xff] (!%p192_p2)   ;;  %s718_s20 = sshll.u32 (!%p192_p2), %s954_s1, 4  ;;  %v894_v1 = vld [vmem:[%s1027_s3 + $0x8] sm:$0xff] (!%p192_p2)   ;;  %v895_v2 = vld [vmem:[%s1027_s3 + $0x10] sm:$0xff] (!%p192_p2)   ;;  %p235_p4 = scmp.lt.s32.totalorder (!%p192_p2), %s954_s1, 3 }
   0x6   : > { %195 = sbr.rel (%p192_p2) target bundleno = 304 (0x130), region = 36  ;;  %p224_p3 = scmp.lt.s32.totalorder (!%p192_p2), %s718_s20, 63  ;;  %836 = vmatprep.subr.bf16.mxu0 (!%p192_p2), %v893_v0  ;;  %868 = vmatprep.subr.bf16.mxu1 (!%p192_p2), %v893_v0  ;;  %v896_v3 = vld [vmem:[%s1027_s3 + $0x18] sm:$0xff] (!%p192_p2)   ;;  %v897_v5 = vld [vmem:[%s1027_s3 + $0x20] sm:$0xff] (!%p192_p2)   ;;  %v898_v7 = vld [vmem:[%s1027_s3 + $0x28] sm:$0xff] (!%p192_p2)  }
   0x7   : > { %837 = vmatpush3.bf16.msra.mxu0 (!%p192_p2), %v893_v0  ;;  %876 = vmatpush3.bf16.msra.mxu1 (!%p192_p2), %v893_v0  ;;  %v899_v8 = vld [vmem:[%s1027_s3 + $0x30] sm:$0xff] (!%p192_p2)   ;;  %v900_v9 = vld [vmem:[%s1027_s3 + $0x38] sm:$0xff] (!%p192_p2)  }
   0x8   : > { %838 = vmatprep.subr.bf16.mxu0 (!%p192_p2), %v894_v1  ;;  %869 = vmatprep.subr.bf16.mxu1 (!%p192_p2), %v894_v1 }
   0xb   : > { %839 = vmatpush3.bf16.msra.mxu0 (!%p192_p2), %v894_v1  ;;  %877 = vmatpush3.bf16.msra.mxu1 (!%p192_p2), %v894_v1 }
   0xc   : > { %840 = vmatprep.subr.bf16.mxu0 (!%p192_p2), %v895_v2  ;;  %870 = vmatprep.subr.bf16.mxu1 (!%p192_p2), %v895_v2 }
   0xd   : > { %s1031_s20 = smov (!%p224_p3, %s718_s20), 63  ;;  %s1033_s1 = smov (!%p235_p4, %s954_s1), 3 }
   0xe   : > { %s719_s25 = sshll.u32 %s1031_s20, 2  ;;  %s722_s17 = sshll.u32 %s1033_s1, 1 }
   0xf   : > { %s976_s28 = scalar_lea.vmem %s1024_s0, %s719_s25  ;;  %841 = vmatpush3.bf16.msra.mxu0 %v895_v2  ;;  %878 = vmatpush3.bf16.msra.mxu1 %v895_v2  ;;  %s1006_s16 = scalar_lea.vmem %s1028_s4, %s719_s25 }
  0x10   : > { %v901_v4 = vld [vmem:[%s976_s28] sm:$0xff]   ;;  %842 = vmatprep.subr.bf16.mxu0 %v896_v3  ;;  %871 = vmatprep.subr.bf16.mxu1 %v896_v3  ;;  %v902_v10 = vld [vmem:[%s976_s28 + $0x8] sm:$0xff]   ;;  %v903_v12 = vld [vmem:[%s976_s28 + $0x10] sm:$0xff]   ;;  %s238_s20 = scalar_lea.vmem %s1029_s5, %s722_s17 }
  0x11   : > { %852 = vmatprep.mubr.bf16.mxu0 %v901_v4  ;;  %v905_v6 = vld [vmem:[%s976_s28 + $0x20] sm:$0xff]   ;;  %v906_v11 = vld [vmem:[%s976_s28 + $0x28] sm:$0xff]   ;;  %v907_v13 = vld [vmem:[%s976_s28 + $0x30] sm:$0xff]  }
  0x12   : > { %860 = vmatprep.mubr.bf16.mxu1 %v905_v6  ;;  %v904_v14 = vld [vmem:[%s976_s28 + $0x18] sm:$0xff]  }
  0x13   : > { %843 = vmatpush3.bf16.msra.mxu0 %v896_v3  ;;  %879 = vmatpush3.bf16.msra.mxu1 %v896_v3  ;;  %v908_v15 = vld [vmem:[%s976_s28 + $0x38] sm:$0xff]  }
  0x14   : > { %844 = vmatprep.subr.bf16.mxu0 %v897_v5  ;;  %872 = vmatprep.subr.bf16.mxu1 %v897_v5 }
  0x17   : > { %845 = vmatpush3.bf16.msra.mxu0 %v897_v5  ;;  %880 = vmatpush3.bf16.msra.mxu1 %v897_v5 }
  0x18   : > { %846 = vmatprep.subr.bf16.mxu0 %v898_v7  ;;  %873 = vmatprep.subr.bf16.mxu1 %v898_v7 }
  0x1b   : > { %847 = vmatpush3.bf16.msra.mxu0 %v898_v7  ;;  %881 = vmatpush3.bf16.msra.mxu1 %v898_v7 }
  0x1c   : > { %848 = vmatprep.subr.bf16.mxu0 %v899_v8  ;;  %874 = vmatprep.subr.bf16.mxu1 %v899_v8 }
  0x1f   : > { %849 = vmatpush3.bf16.msra.mxu0 %v899_v8  ;;  %882 = vmatpush3.bf16.msra.mxu1 %v899_v8 }
  0x20   : > { %850 = vmatprep.subr.bf16.mxu0 %v900_v9  ;;  %875 = vmatprep.subr.bf16.mxu1 %v900_v9 }
  0x23   : > { %851 = vmatpush3.bf16.msra.mxu0 %v900_v9  ;;  %883 = vmatpush3.bf16.msra.mxu1 %v900_v9 }
  0x26   : > { %853 = vmatmul.mubr.bf16.vlgmr.msra.gmra.mrb[0].mxu0 %v902_v10  ;;  %861 = vmatmul.mubr.bf16.vlgmr.msra.gmra.mrb[0].mxu1 %v906_v11 }
  0x27   : > { %856 = vmatprep.mubr.bf16.mxu0 %v903_v12  ;;  %864 = vmatprep.mubr.bf16.mxu1 %v907_v13 }
  0x2e   : > { %857 = vmatmul.mubr.bf16.gmra.mrb[4].mxu0 %v904_v14  ;;  %865 = vmatmul.mubr.bf16.gmra.mrb[4].mxu1 %v908_v15 }
  0xf9   : > { %v854_v16 = vpop.f32.mrb[0].mxu0  ;;  %v862_v17 = vpop.f32.mrb[0].mxu1 }
  0xfa   : > { %v402_v18 = vpop.f32.mrb[1].mxu0  ;;  %v434_v19 = vpop.f32.mrb[1].mxu1  ;;  %v568_v31 = vmul.f32 %v854_v16, %v854_v16  ;;  %v576_v3 = vmul.f32 %v862_v17, %v862_v17 }
  0xfb   : > { %v855_v20 = vpop.f32.mrb[2].mxu0  ;;  %v863_v21 = vpop.f32.mrb[2].mxu1  ;;  %v566_v22 = vmul.f32 %v402_v18, %v402_v18  ;;  %v574_v61 = vmul.f32 %v434_v19, %v434_v19 }
  0xfc   : > { %v781_v23 = vpack.c.bf16 %v855_v20, %v854_v16  ;;  %v405_v24 = vpop.f32.mrb[3].mxu0  ;;  %v801_v25 = vpack.c.bf16 %v863_v21, %v862_v17  ;;  %v437_v26 = vpop.f32.mrb[3].mxu1  ;;  %v569_v34 = vmul.f32 %v855_v20, %v855_v20  ;;  %v577_v6 = vmul.f32 %v863_v21, %v863_v21 }
  0xfd   : > { %v776_v27 = vpack.c.bf16 %v405_v24, %v402_v18  ;;  %v545_v28 = vadd.f32 %v405_v24, %v402_v18  ;;  %v567_v29 = vmul.f32 %v405_v24, %v405_v24  ;;  %v796_v30 = vpack.c.bf16 %v437_v26, %v434_v19 }
  0xfe   : > { %813 = vst [vmem:[%s1006_s16 + $0x8] sm:$0xff] %v781_v23   ;;  %817 = vst [vmem:[%s1006_s16 + $0x28] sm:$0xff] %v801_v25   ;;  %v575_v2 = vmul.f32 %v437_v26, %v437_v26 }
  0xff   : > { %777 = vst [vmem:[%s1006_s16] sm:$0xff] %v776_v27   ;;  %v546_v32 = vadd.f32 %v854_v16, %v545_v28  ;;  %v582_v33 = vadd.f32 %v567_v29, %v566_v22  ;;  %816 = vst [vmem:[%s1006_s16 + $0x20] sm:$0xff] %v796_v30   ;;  %v917_v27 = vmov 1966171168   ;;  %v609_v29 = vlaneseq }
 0x100   : > { %v607_v28 = vunpack.c.l.s4 %v917_v27 }
 0x101   : > { %v583_v35 = vadd.f32 %v582_v33, %v568_v31  ;;  %v858_v36 = vpop.f32.mrb[4].mxu0  ;;  %v547_v37 = vadd.f32 %v855_v20, %v546_v32  ;;  %v866_v38 = vpop.f32.mrb[4].mxu1  ;;  %vm623_vm0 = vcmp.lt.s32.totalorder %v609_v29, 256 }
 0x102   : > { %v418_v39 = vpop.f32.mrb[5].mxu0  ;;  %v450_v40 = vpop.f32.mrb[5].mxu1  ;;  %v572_v55 = vmul.f32 %v858_v36, %v858_v36  ;;  %v580_v15 = vmul.f32 %v866_v38, %v866_v38 }
 0x103   : > { %v548_v41 = vadd.f32 %v547_v37, %v418_v39  ;;  %v570_v42 = vmul.f32 %v418_v39, %v418_v39  ;;  %v584_v43 = vadd.f32 %v583_v35, %v569_v34  ;;  %v859_v44 = vpop.f32.mrb[6].mxu0  ;;  %v867_v45 = vpop.f32.mrb[6].mxu1  ;;  %v578_v9 = vmul.f32 %v450_v40, %v450_v40 }
 0x104   : > { %v791_v46 = vpack.c.bf16 %v859_v44, %v858_v36  ;;  %v421_v47 = vpop.f32.mrb[7].mxu0  ;;  %v811_v48 = vpack.c.bf16 %v867_v45, %v866_v38  ;;  %v453_v49 = vpop.f32.mrb[7].mxu1  ;;  %v573_v58 = vmul.f32 %v859_v44, %v859_v44  ;;  %v608_v34 = vunpack.c.0.s8 %v607_v28 }
 0x105   : > { %v585_v50 = vadd.f32 %v584_v43, %v570_v42  ;;  %v786_v51 = vpack.c.bf16 %v421_v47, %v418_v39  ;;  %v549_v52 = vadd.f32 %v548_v41, %v421_v47  ;;  %v571_v53 = vmul.f32 %v421_v47, %v421_v47 }
 0x106   : > { %815 = vst [vmem:[%s1006_s16 + $0x18] sm:$0xff] %v791_v46   ;;  %819 = vst [vmem:[%s1006_s16 + $0x38] sm:$0xff] %v811_v48   ;;  %v806_v54 = vpack.c.bf16 %v453_v49, %v450_v40  ;;  %v579_v14 = vmul.f32 %v453_v49, %v453_v49  ;;  %v610_v35 = vshrl.u32 %v609_v29, 7 }
 0x107   : > { %814 = vst [vmem:[%s1006_s16 + $0x10] sm:$0xff] %v786_v51   ;;  %v550_v56 = vadd.f32 %v858_v36, %v549_v52  ;;  %v586_v57 = vadd.f32 %v585_v50, %v571_v53 }
 0x108   : > { %818 = vst [vmem:[%s1006_s16 + $0x30] sm:$0xff] %v806_v54   ;;  %v611_v39 = vsub.s32 %v608_v34, %v610_v35 }
 0x109   : > { %v587_v59 = vadd.f32 %v586_v57, %v572_v55  ;;  %v551_v60 = vadd.f32 %v859_v44, %v550_v56 }
 0x10b   : > { %v552_v62 = vadd.f32 %v551_v60, %v434_v19  ;;  %v588_v63 = vadd.f32 %v587_v59, %v573_v58  ;;  %v581_v19 = vmul.f32 %v867_v45, %v867_v45 }
 0x10d   : > { %v589_v0 = vadd.f32 %v588_v63, %v574_v61  ;;  %v553_v1 = vadd.f32 %v552_v62, %v437_v26 }
 0x10f   : > { %v554_v4 = vadd.f32 %v862_v17, %v553_v1  ;;  %v590_v5 = vadd.f32 %v589_v0, %v575_v2 }
 0x111   : > { %v591_v7 = vadd.f32 %v590_v5, %v576_v3  ;;  %v555_v8 = vadd.f32 %v863_v21, %v554_v4 }
 0x113   : > { %v556_v10 = vadd.f32 %v555_v8, %v450_v40  ;;  %v592_v11 = vadd.f32 %v591_v7, %v577_v6 }
 0x115   : > { %v593_v12 = vadd.f32 %v592_v11, %v578_v9  ;;  %v557_v13 = vadd.f32 %v556_v10, %v453_v49 }
 0x117   : > { %v558_v16 = vadd.f32 %v866_v38, %v557_v13  ;;  %v594_v18 = vadd.f32 %v593_v12, %v579_v14 }
 0x119   : > { %v559_v20 = vadd.f32 %v867_v45, %v558_v16  ;;  %v595_v22 = vadd.f32 %v594_v18, %v580_v15 }
 0x11b   : > { %v560_v23 = vrot.slane %v559_v20, 4  ;;  %v596_v17 = vadd.f32 %v595_v22, %v581_v19 }
 0x11d   : > { %v561_v24 = vadd.f32 %v560_v23, %v559_v20  ;;  %v597_v25 = vrot.slane %v596_v17, 4 }
 0x11f   : > { %v562_v26 = vrot.slane %v561_v24, 2  ;;  %v598_v21 = vadd.f32 %v597_v25, %v596_v17 }
 0x121   : > { %v563_v30 = vadd.f32 %v562_v26, %v561_v24  ;;  %v599_v31 = vrot.slane %v598_v21, 2 }
 0x123   : > { %v564_v32 = vrot.slane %v563_v30, 1  ;;  %v600_v33 = vadd.f32 %v599_v31, %v598_v21 }
 0x125   : > { %v601_v36 = vrot.slane %v600_v33, 1  ;;  %v565_v37 = vadd.f32 %v564_v32, %v563_v30 }
 0x127   : > { %v602_v38 = vadd.f32 %v601_v36, %v600_v33 }
 0x129   : > { %v605_v40 = vcombine.low %v565_v37, %v602_v38 }
 0x12b   : > { %v612_v41 = vrot.slane %v605_v40, %v611_v39 }
 0x12d   : > { %v619_v42 = vrot.slane %v612_v41, %v611_v39 }
 0x12f   : > { %625 = vst.msk [vmem:[%s238_s20] sm:$0x3] %vm623_vm0, %v619_v42 }
 0x130 PF: > { %s16_s18 = sadd.s32 1, %s915_s18  }
 0x131   : > { %p13_p5 = scmp.ge.s32.totalorder %s16_s18, 6  }
 0x133   :  { %15 = sbr.rel (!%p13_p5) target bundleno = 1 (0x1), region = 78 }

// kernel: bottleneck_forward.5
= control target key start
LH: loop header
LB: loop body
LE: loop exit
PB: predicated region body
PF: predicated region fallthrough
CT: control target
= control target key end

     0   :  { %s5175_s18 = smov 0   ;;  %s6221_s0 = inlined_call_operand.vmem [shape: bf16[2,16,16,128], index: 0, kind: input, shape index: {}]   ;;  %s6222_s1 = inlined_call_operand.vmem [shape: f32[1,128], index: 1, kind: input, shape index: {}]   ;;  %s6223_s2 = inlined_call_operand.vmem [shape: f32[1,128], index: 2, kind: input, shape index: {}]   ;;  %s6224_s3 = inlined_call_operand.vmem [shape: bf16[3,3,128,128], index: 3, kind: input, shape index: {}]   ;;  %s6225_s4 = inlined_call_operand.vmem [shape: bf16[2,16,16,128], index: 4, kind: output, shape index: {0}]   ;;  %s6226_s5 = inlined_call_operand.vmem [shape: f32[2,1,256], index: 5, kind: output, shape index: {1}]  }
   0x1 LB: > { %s3331_s19 = sadd.s32 4294967295, %s5139_s18   ;;  %p3335_p0 = scmp.ge.s32.totalorder %s5139_s18, 1  ;;  %s5139_s18 = sphi %s5175_s18, %s16_s18  }
   0x2   : > { %p190_p1 = scmp.lt.s32.totalorder %s5139_s18, 3 }
   0x4   : > { %p191_p2 = pnand %p3335_p0, %p190_p1 }
   0x6   : > { %194 = sbr.rel (%p191_p2) target bundleno = 571 (0x23b), region = 36 }
   0xd   : > { %v5053_v0 = vld [vmem:[%s6224_s3 + $0x40] sm:$0xff]   ;;  %v6227_v2 = vmov 0.0|0.0   ;;  %v5055_v3 = vld [vmem:[%s6224_s3 + $0x48] sm:$0xff]   ;;  %p222_p3 = scmp.lt.s32.totalorder %s3331_s19, 1  ;;  %v5057_v5 = vld [vmem:[%s6224_s3 + $0x50] sm:$0xff]   ;;  %vm444_vm0 = vcmask 1040384  }
   0xe   : > { %v5054_v1 = vld [vmem:[%s6224_s3 + $0x100] sm:$0xff]   ;;  %4353 = vmatprep.mubr.bf16.mxu1 %v6227_v2  ;;  %4337 = vmatprep.subr.bf16.mxu1 %v5053_v0  ;;  %v5056_v4 = vld [vmem:[%s6224_s3 + $0x108] sm:$0xff]   ;;  %v5058_v6 = vld [vmem:[%s6224_s3 + $0x110] sm:$0xff]   ;;  %vm546_vm1 = vcmask 1046528   ;;  %vm5142_vm2 = vmmov 1  }
   0xf   : > { %4529 = vmatprep.subr.bf16.mxu0 %v5054_v1  ;;  %4338 = vmatpush3.bf16.msra.mxu1 %v5053_v0  ;;  %s6272_s19 = smov (!%p222_p3, %s3331_s19), 1  ;;  %v5059_v7 = vld [vmem:[%s6224_s3 + $0x58] sm:$0xff]   ;;  %v5061_v9 = vld [vmem:[%s6224_s3 + $0x60] sm:$0xff]   ;;  %v5063_v11 = vld [vmem:[%s6224_s3 + $0x68] sm:$0xff]  }
  0x10   : > { %4530 = vmatpush3.bf16.msra.mxu0 %v5054_v1  ;;  %4339 = vmatprep.subr.bf16.mxu1 %v5055_v3  ;;  %v5060_v8 = vld [vmem:[%s6224_s3 + $0x118] sm:$0xff]   ;;  %s3913_s11 = sshll.u32 %s6272_s19, 7  ;;  %v5062_v10 = vld [vmem:[%s6224_s3 + $0x120] sm:$0xff]   ;;  %v5064_v14 = vld [vmem:[%s6224_s3 + $0x128] sm:$0xff]  }
  0x11   : > { %4531 = vmatprep.subr.bf16.mxu0 %v5056_v4  ;;  %s5222_s20 = scalar_lea.vmem %s6221_s0, %s3913_s11  ;;  %v5231_v13 = vld [vmem:[%s6222_s1] ss:$0 sm:$0xff]  ;;  %v5065_v23 = vld [vmem:[%s6224_s3 + $0x70] sm:$0xff]   ;;  %v5067_v37 = vld [vmem:[%s6224_s3 + $0x78] sm:$0xff]  }
  0x12   : > { %v3948_v12 = vld [vmem:[%s5222_s20] sm:$0xff]   ;;  %v4091_v18 = vld [vmem:[%s5222_s20 + $0x8] sm:$0xff]   ;;  %v5066_v24 = vld [vmem:[%s6224_s3 + $0x130] sm:$0xff]  }
  0x13   : > { %4340 = vmatpush3.bf16.msra.mxu1 %v5055_v3  ;;  %v3949_v15 = vunpack.c.l.bf16 %v3948_v12  ;;  %v3950_v16 = vunpack.c.h.bf16 %v3948_v12  ;;  %v5239_v17 = vld [vmem:[%s6223_s2] ss:$0 sm:$0xff]  ;;  %v3953_v21 = vunpack.c.l.bf16 %v4091_v18  ;;  %v3954_v22 = vunpack.c.h.bf16 %v4091_v18  ;;  %v4092_v29 = vld [vmem:[%s5222_s20 + $0x10] sm:$0xff]   ;;  %v4093_v32 = vld [vmem:[%s5222_s20 + $0x18] sm:$0xff]  }
  0x14   : > { %4532 = vmatpush3.bf16.msra.mxu0 %v5056_v4  ;;  %4341 = vmatprep.subr.bf16.mxu1 %v5057_v5  ;;  %v3957_v30 = vunpack.c.l.bf16 %v4092_v29  ;;  %v3958_v31 = vunpack.c.h.bf16 %v4092_v29  ;;  %v3961_v40 = vunpack.c.l.bf16 %v4093_v32  ;;  %v3962_v41 = vunpack.c.h.bf16 %v4093_v32  ;;  %v5068_v42 = vld [vmem:[%s6224_s3 + $0x138] sm:$0xff]   ;;  %v4094_v46 = vld [vmem:[%s5222_s20 + $0x20] sm:$0xff]   ;;  %v4095_v57 = vld [vmem:[%s5222_s20 + $0x28] sm:$0xff]  }
  0x15   : > { %4533 = vmatprep.subr.bf16.mxu0 %v5058_v6  ;;  %v308_v19 = vmul.f32 %v3949_v15, %v5231_v13  ;;  %v309_v20 = vmul.f32 %v3950_v16, %v5231_v13  ;;  %v310_v27 = vmul.f32 %v3953_v21, %v5231_v13  ;;  %v311_v28 = vmul.f32 %v3954_v22, %v5231_v13  ;;  %v5069_v56 = vld [vmem:[%s6224_s3] sm:$0xff]   ;;  %v4096_v1 = vld [vmem:[%s5222_s20 + $0x30] sm:$0xff]   ;;  %v5074_v32 = vld [vmem:[%s6224_s3 + $0x158] sm:$0xff]  }
  0x16   : > { %v312_v38 = vmul.f32 %v3957_v30, %v5231_v13  ;;  %v313_v39 = vmul.f32 %v3958_v31, %v5231_v13  ;;  %v314_v52 = vmul.f32 %v3961_v40, %v5231_v13  ;;  %v315_v53 = vmul.f32 %v3962_v41, %v5231_v13  ;;  %v5070_v58 = vld [vmem:[%s6224_s3 + $0x140] sm:$0xff]   ;;  %v5075_v22 = vld [vmem:[%s6224_s3 + $0x10] sm:$0xff]   ;;  %v4099_v40 = vld [vmem:[%s5222_s20 + $0x48] sm:$0xff]  }
  0x17   : > { %4342 = vmatpush3.bf16.msra.mxu1 %v5057_v5  ;;  %v347_v25 = vadd.f32 %v5239_v17, %v308_v19  ;;  %v348_v26 = vadd.f32 %v5239_v17, %v309_v20  ;;  %v349_v35 = vadd.f32 %v5239_v17, %v310_v27  ;;  %v350_v36 = vadd.f32 %v5239_v17, %v311_v28  ;;  %vm5437_vm3 = vmpackc.low %vm546_vm1, %vm5142_vm2 }
  0x18   : > { %4534 = vmatpush3.bf16.msra.mxu0 %v5058_v6  ;;  %4343 = vmatprep.subr.bf16.mxu1 %v5059_v7  ;;  %v351_v49 = vadd.f32 %v5239_v17, %v312_v38  ;;  %v352_v50 = vadd.f32 %v5239_v17, %v313_v39  ;;  %v3965_v54 = vunpack.c.l.bf16 %v4094_v46  ;;  %v353_v61 = vadd.f32 %v5239_v17, %v314_v52  ;;  %v5078_v38 = vld [vmem:[%s6224_s3 + $0x18] sm:$0xff]   ;;  %v4098_v39 = vld [vmem:[%s5222_s20 + $0x40] sm:$0xff]   ;;  %vm5629_vm4 = vmneg %vm444_vm0 }
  0x19   : > { %4535 = vmatprep.subr.bf16.mxu0 %v5060_v8  ;;  %v5256_v33 = vmax.f32 %v347_v25, 0.0  ;;  %v5258_v34 = vmax.f32 %v348_v26, 0.0  ;;  %v5275_v47 = vmax.f32 %v349_v35, 0.0  ;;  %v5277_v48 = vmax.f32 %v350_v36, 0.0  ;;  %v4097_v25 = vld [vmem:[%s5222_s20 + $0x38] sm:$0xff]   ;;  %v5073_v26 = vld [vmem:[%s6224_s3 + $0x150] sm:$0xff]   ;;  %vm5659_vm5 = vmpackc.low %vm5142_vm2, %vm5629_vm4 }
  0x1a   : > { %v5293_v59 = vmax.f32 %v351_v49, 0.0  ;;  %v5295_v60 = vmax.f32 %v352_v50, 0.0  ;;  %v354_v62 = vadd.f32 %v5239_v17, %v315_v53  ;;  %v3966_v63 = vunpack.c.h.bf16 %v4094_v46  ;;  %v5076_v50 = vld [vmem:[%s6224_s3 + $0x160] sm:$0xff]  }
  0x1b   : > { %4344 = vmatpush3.bf16.msra.mxu1 %v5059_v7  ;;  %v447_v43 = vrot.slane %v5256_v33, 7  ;;  %v448_v44 = vrot.slane %v5258_v34, 7  ;;  %v666_v45 = vpack.c.bf16 %v5258_v34, %v5256_v33  ;;  %v316_v0 = vmul.f32 %v3965_v54, %v5231_v13  ;;  %v5081_v52 = vld [vmem:[%s6224_s3 + $0x20] sm:$0xff]  }
  0x1c   : > { %4536 = vmatpush3.bf16.msra.mxu0 %v5060_v8  ;;  %4345 = vmatprep.subr.bf16.mxu1 %v5061_v9  ;;  %v5303_v3 = vpack.c.bf16 %v5277_v48, %v5275_v47  ;;  %v3969_v4 = vunpack.c.l.bf16 %v4095_v57  ;;  %v317_v5 = vmul.f32 %v3966_v63, %v5231_v13  ;;  %v3970_v7 = vunpack.c.h.bf16 %v4095_v57  ;;  %v5071_v8 = vld [vmem:[%s6224_s3 + $0x148] sm:$0xff]  }
  0x1d   : > { %4537 = vmatprep.subr.bf16.mxu0 %v5062_v10  ;;  %v449_v51 = vsel %vm444_vm0, %v447_v43, %v448_v44  ;;  %4545 = vmatprep.mubr.bf16.mxu0 %v666_v45  ;;  %v355_v6 = vadd.f32 %v5239_v17, %v316_v0  ;;  %v3974_v12 = vunpack.c.h.bf16 %v4096_v1  ;;  %v5319_v15 = vmax.f32 %v354_v62, 0.0  ;;  %v5077_v0 = vld [vmem:[%s6224_s3 + $0x168] sm:$0xff]  }
  0x1e   : > { %v5284_v55 = vpack.c.bf16 %v449_v51, %v447_v43  ;;  %v356_v16 = vadd.f32 %v5239_v17, %v317_v5  ;;  %v318_v18 = vmul.f32 %v3969_v4, %v5231_v13  ;;  %v319_v19 = vmul.f32 %v3970_v7, %v5231_v13  ;;  %v4100_v7 = vld [vmem:[%s5222_s20 + $0x50] sm:$0xff]  }
  0x1f   : > { %4346 = vmatpush3.bf16.msra.mxu1 %v5061_v9  ;;  %v5312_v9 = vpack.c.bf16 %v5295_v60, %v5293_v59  ;;  %v5326_v20 = vmax.f32 %v355_v6, 0.0  ;;  %v3977_v30 = vunpack.c.l.bf16 %v4097_v25  ;;  %v3978_v31 = vunpack.c.h.bf16 %v4097_v25 }
  0x20   : > { %4538 = vmatpush3.bf16.msra.mxu0 %v5062_v10  ;;  %4347 = vmatprep.subr.bf16.mxu1 %v5063_v11  ;;  %6245 = vst [vmem:[#allocation2_spill] sm:$0xff] %v5284_v55  ;;  %v5072_v10 = vld [vmem:[%s6224_s3 + $0x8] sm:$0xff]   ;;  %v5328_v21 = vmax.f32 %v356_v16, 0.0  ;;  %v357_v28 = vadd.f32 %v5239_v17, %v318_v18  ;;  %v358_v29 = vadd.f32 %v5239_v17, %v319_v19  ;;  %v3981_v49 = vunpack.c.l.bf16 %v4098_v39  ;;  %v4101_v16 = vld [vmem:[%s5222_s20 + $0x58] sm:$0xff]   ;;  %v5079_v18 = vld [vmem:[%s6224_s3 + $0x170] sm:$0xff]  }
  0x21   : > { %4539 = vmatprep.subr.bf16.mxu0 %v5064_v14  ;;  %v322_v43 = vmul.f32 %v3977_v30, %v5231_v13  ;;  %v323_v44 = vmul.f32 %v3978_v31, %v5231_v13  ;;  %v3982_v51 = vunpack.c.h.bf16 %v4098_v39  ;;  %v3985_v53 = vunpack.c.l.bf16 %v4099_v40  ;;  %v5080_v31 = vld [vmem:[%s6224_s3 + $0x178] sm:$0xff]  }
  0x22   : > { %v5351_v35 = vpack.c.bf16 %v5328_v21, %v5326_v20  ;;  %v5363_v41 = vmax.f32 %v357_v28, 0.0  ;;  %v3986_v54 = vunpack.c.h.bf16 %v4099_v40  ;;  %v324_v63 = vmul.f32 %v3981_v49, %v5231_v13 }
  0x23   : > { %4348 = vmatpush3.bf16.msra.mxu1 %v5063_v11  ;;  %v3973_v11 = vunpack.c.l.bf16 %v4096_v1  ;;  %v361_v57 = vadd.f32 %v5239_v17, %v322_v43  ;;  %v550_v1 = vrot.slane %v5258_v34, 1  ;;  %v325_v4 = vmul.f32 %v3982_v51, %v5231_v13 }
  0x24   : > { %4540 = vmatpush3.bf16.msra.mxu0 %v5064_v14  ;;  %4349 = vmatprep.subr.bf16.mxu1 %v5065_v23  ;;  %v5317_v14 = vmax.f32 %v353_v61, 0.0  ;;  %v549_v61 = vrot.slane %v5256_v33, 1  ;;  %v552_v33 = vrot.slane %v5275_v47, 1  ;;  %v326_v5 = vmul.f32 %v3985_v53, %v5231_v13  ;;  %v4102_v53 = vld [vmem:[%s5222_s20 + $0x60] sm:$0xff]  }
  0x25   : > { %4541 = vmatprep.subr.bf16.mxu0 %v5066_v24  ;;  %v327_v6 = vmul.f32 %v3986_v54, %v5231_v13  ;;  %v5407_v34 = vmax.f32 %v361_v57, 0.0  ;;  %v555_v28 = vrot.slane %v5293_v59, 1  ;;  %v5087_v54 = vld [vmem:[%s6224_s3 + $0x38] sm:$0xff]  }
  0x26   : > { %v5342_v27 = vpack.c.bf16 %v5319_v15, %v5317_v14  ;;  %v551_v19 = vsel %vm546_vm1, %v549_v61, %v550_v1  ;;  %v365_v25 = vadd.f32 %v5239_v17, %v326_v5 }
  0x27   : > { %4350 = vmatpush3.bf16.msra.mxu1 %v5065_v23  ;;  %v320_v23 = vmul.f32 %v3973_v11, %v5231_v13  ;;  %v553_v11 = vrot.slane %v5277_v48, 1  ;;  %v5441_v40 = vpack.c.bf16 %v550_v1, %v551_v19  ;;  %v3997_v1 = vunpack.c.l.bf16 %v4102_v53 }
  0x28   : > { %4542 = vmatpush3.bf16.msra.mxu0 %v5066_v24  ;;  %4351 = vmatprep.subr.bf16.mxu1 %v5067_v37  ;;  %v321_v24 = vmul.f32 %v3974_v12, %v5231_v13  ;;  %v363_v12 = vadd.f32 %v5239_v17, %v324_v63  ;;  %v5456_v57 = vmax.f32 %v365_v25, 0.0 }
  0x29   : > { %4543 = vmatprep.subr.bf16.mxu0 %v5068_v42  ;;  %v359_v36 = vadd.f32 %v5239_v17, %v320_v23  ;;  %v3989_v23 = vunpack.c.l.bf16 %v4100_v7 }
  0x2a   : > { %v5443_v43 = vmax.f32 %v363_v12, 0.0 }
  0x2b   : > { %4352 = vmatpush3.bf16.msra.mxu1 %v5067_v37  ;;  %v360_v37 = vadd.f32 %v5239_v17, %v321_v24  ;;  %v3990_v24 = vunpack.c.h.bf16 %v4100_v7 }
  0x2c   : > { %4544 = vmatpush3.bf16.msra.mxu0 %v5068_v42  ;;  %4385 = vmatprep.subr.bf16.mxu1 %v5069_v56  ;;  %v5365_v42 = vmax.f32 %v358_v29, 0.0  ;;  %v5085_v29 = vld [vmem:[%s6224_s3 + $0x30] sm:$0xff]  }
  0x2d   : > { %4577 = vmatprep.subr.bf16.mxu0 %v5070_v58  ;;  %v5372_v46 = vmax.f32 %v360_v37, 0.0  ;;  %v3994_v37 = vunpack.c.h.bf16 %v4101_v16  ;;  %v329_v51 = vmul.f32 %v3990_v24, %v5231_v13 }
  0x2e   : > { %4354 = vmatmul.mubr.bf16.vlgmr.msra.gmra.mrb[0].mxu1 %v666_v45  ;;  %v5370_v45 = vmax.f32 %v359_v36, 0.0  ;;  %v3993_v36 = vunpack.c.l.bf16 %v4101_v16  ;;  %v3998_v16 = vunpack.c.h.bf16 %v4102_v53 }
  0x2f   : > { %4546 = vmatmul.mubr.bf16.vlgmr.msra.gmra.mrb[0].mxu0 %v5303_v3  ;;  %4386 = vmatpush3.bf16.msra.mxu1 %v5069_v56  ;;  %v5382_v56 = vpack.c.bf16 %v5365_v42, %v5363_v41  ;;  %v331_v63 = vmul.f32 %v3994_v37, %v5231_v13  ;;  %v368_v7 = vadd.f32 %v5239_v17, %v329_v51 }
  0x30   : > { %4578 = vmatpush3.bf16.msra.mxu0 %v5070_v58  ;;  %4357 = vmatprep.mubr.bf16.mxu1 %v5303_v3  ;;  %v362_v58 = vadd.f32 %v5239_v17, %v323_v44  ;;  %v5389_v62 = vpack.c.bf16 %v5372_v46, %v5370_v45  ;;  %v558_v44 = vrot.slane %v5317_v14, 1  ;;  %v330_v61 = vmul.f32 %v3993_v36, %v5231_v13 }
  0x31   : > { %4579 = vmatprep.subr.bf16.mxu0 %v5071_v8  ;;  %4549 = vmatprep.mubr.bf16.mxu0 %v5312_v9  ;;  %v5499_v37 = vmax.f32 %v368_v7, 0.0  ;;  %v459_v7 = vrot.slane %v5326_v20, 7 }
  0x32   : > { %4387 = vmatprep.subr.bf16.mxu1 %v5072_v10  ;;  %v369_v19 = vadd.f32 %v5239_v17, %v330_v61 }
  0x33   : > { %4388 = vmatpush3.bf16.msra.mxu1 %v5072_v10  ;;  %v5409_v10 = vmax.f32 %v362_v58, 0.0 }
  0x34   : > { %4580 = vmatpush3.bf16.msra.mxu0 %v5071_v8  ;;  %4389 = vmatprep.subr.bf16.mxu1 %v5075_v22  ;;  %v5083_v8 = vld [vmem:[%s6224_s3 + $0x28] sm:$0xff]   ;;  %v5515_v51 = vmax.f32 %v369_v19, 0.0 }
  0x35   : > { %4581 = vmatprep.subr.bf16.mxu0 %v5073_v26  ;;  %v5428_v30 = vpack.c.bf16 %v5409_v10, %v5407_v34 }
  0x36   : > { %4358 = vmatmul.mubr.bf16.gmra.mrb[4].mxu1 %v5312_v9 }
  0x37   : > { %4550 = vmatmul.mubr.bf16.gmra.mrb[4].mxu0 %v5342_v27  ;;  %4361 = vmatprep.mubr.bf16.mxu1 %v5342_v27  ;;  %6246 = vst [vmem:[#allocation3_spill] sm:$0xff] %v5428_v30 }
  0x38   : > { %4582 = vmatpush3.bf16.msra.mxu0 %v5073_v26  ;;  %4553 = vmatprep.mubr.bf16.mxu0 %v5351_v35  ;;  %v366_v26 = vadd.f32 %v5239_v17, %v327_v6 }
  0x39   : > { %4583 = vmatprep.subr.bf16.mxu0 %v5074_v32  ;;  %4390 = vmatpush3.bf16.msra.mxu1 %v5075_v22  ;;  %v364_v22 = vadd.f32 %v5239_v17, %v325_v4  ;;  %v4103_v4 = vld [vmem:[%s5222_s20 + $0x68] sm:$0xff]  }
  0x3a   : > { %4391 = vmatprep.subr.bf16.mxu1 %v5078_v38  ;;  %v5458_v58 = vmax.f32 %v366_v26, 0.0  ;;  %v4002_v24 = vunpack.c.h.bf16 %v4103_v4  ;;  %v561_v26 = vrot.slane %v5326_v20, 1  ;;  %v567_v20 = vrot.slane %v5370_v45, 1 }
  0x3b   : > { %v5446_v49 = vmax.f32 %v364_v22, 0.0  ;;  %v370_v22 = vadd.f32 %v5239_v17, %v331_v63  ;;  %v564_v63 = vrot.slane %v5363_v41, 1 }
  0x3c   : > { %4584 = vmatpush3.bf16.msra.mxu0 %v5074_v32  ;;  %v556_v32 = vrot.slane %v5295_v60, 1 }
  0x3d   : > { %4585 = vmatprep.subr.bf16.mxu0 %v5076_v50  ;;  %4392 = vmatpush3.bf16.msra.mxu1 %v5078_v38  ;;  %v554_v38 = vsel %vm546_vm1, %v552_v33, %v553_v11  ;;  %v5082_v33 = vld [vmem:[%s6224_s3 + $0x180] sm:$0xff]   ;;  %v5517_v53 = vmax.f32 %v370_v22, 0.0  ;;  %v460_v22 = vrot.slane %v5328_v21, 7 }
  0x3e   : > { %4362 = vmatmul.mubr.bf16.gmra.mrb[8].mxu1 %v5351_v35  ;;  %4393 = vmatprep.subr.bf16.mxu1 %v5081_v52  ;;  %v557_v5 = vsel %vm546_vm1, %v555_v28, %v556_v32  ;;  %v562_v28 = vrot.slane %v5328_v21, 1  ;;  %v5088_v21 = vld [vmem:[%s6224_s3 + $0x198] sm:$0xff]  }
  0x3f   : > { %4554 = vmatmul.mubr.bf16.gmra.mrb[8].mxu0 %v5382_v56  ;;  %4365 = vmatprep.mubr.bf16.mxu1 %v5382_v56  ;;  %v5492_v25 = vpack.c.bf16 %v556_v32, %v557_v5  ;;  %v565_v5 = vrot.slane %v5365_v42, 1 }
  0x40   : > { %4586 = vmatpush3.bf16.msra.mxu0 %v5076_v50  ;;  %4557 = vmatprep.mubr.bf16.mxu0 %v5389_v62  ;;  %v328_v50 = vmul.f32 %v3989_v23, %v5231_v13  ;;  %v4001_v23 = vunpack.c.l.bf16 %v4103_v4 }
  0x41   : > { %4587 = vmatprep.subr.bf16.mxu0 %v5077_v0  ;;  %4394 = vmatpush3.bf16.msra.mxu1 %v5081_v52  ;;  %v559_v52 = vrot.slane %v5319_v15, 1 }
  0x42   : > { %4395 = vmatprep.subr.bf16.mxu1 %v5083_v8  ;;  %v367_v6 = vadd.f32 %v5239_v17, %v328_v50  ;;  %v454_v50 = vrot.slane %v5295_v60, 7  ;;  %v563_v60 = vsel %vm546_vm1, %v561_v26, %v562_v28 }
  0x43   : > { %v560_v12 = vsel %vm546_vm1, %v558_v44, %v559_v52  ;;  %v333_v44 = vmul.f32 %v3998_v16, %v5231_v13 }
  0x44   : > { %4588 = vmatpush3.bf16.msra.mxu0 %v5077_v0  ;;  %v5464_v0 = vpack.c.bf16 %v553_v11, %v554_v38  ;;  %v5482_v11 = vpack.c.bf16 %v5458_v58, %v5456_v57  ;;  %v5497_v36 = vmax.f32 %v367_v6, 0.0  ;;  %v5084_v38 = vld [vmem:[%s6224_s3 + $0x188] sm:$0xff]   ;;  %v5506_v32 = vpack.c.bf16 %v559_v52, %v560_v12 }
  0x45   : > { %4589 = vmatprep.subr.bf16.mxu0 %v5079_v18  ;;  %4396 = vmatpush3.bf16.msra.mxu1 %v5083_v8  ;;  %v5478_v8 = vpack.c.bf16 %v5446_v49, %v5443_v43  ;;  %v335_v52 = vmul.f32 %v4002_v24, %v5231_v13  ;;  %v372_v12 = vadd.f32 %v5239_v17, %v333_v44  ;;  %v568_v44 = vrot.slane %v5372_v46, 1 }
  0x46   : > { %4366 = vmatmul.mubr.bf16.gmra.mrb[12].mxu1 %v5389_v62  ;;  %4397 = vmatprep.subr.bf16.mxu1 %v5085_v29  ;;  %6250 = vst [vmem:[#allocation5_spill] sm:$0xff] %v5482_v11  ;;  %v5546_v24 = vpack.c.bf16 %v562_v28, %v563_v60  ;;  %v566_v28 = vsel %vm546_vm1, %v564_v63, %v565_v5 }
  0x47   : > { %4558 = vmatmul.mubr.bf16.gmra.mrb[12].mxu0 %v5428_v30  ;;  %4369 = vmatprep.mubr.bf16.mxu1 %v5428_v30  ;;  %6249 = vst [vmem:[#allocation4_spill] sm:$0xff] %v5478_v8  ;;  %v5565_v60 = vmax.f32 %v372_v12, 0.0 }
  0x48   : > { %4590 = vmatpush3.bf16.msra.mxu0 %v5079_v18  ;;  %4593 = vmatprep.mubr.msk.bf16.mxu0 %vm5437_vm3, %v5441_v40  ;;  %v5488_v18 = vld [vmem:[%s6224_s3 + $0x80] sm:$0xff]  }
  0x49   : > { %4591 = vmatprep.subr.bf16.mxu0 %v5080_v31  ;;  %4398 = vmatpush3.bf16.msra.mxu1 %v5085_v29  ;;  %v332_v29 = vmul.f32 %v3997_v1, %v5231_v13  ;;  %v5086_v1 = vld [vmem:[%s6224_s3 + $0x190] sm:$0xff]   ;;  %v586_v30 = vrot.slane %v5565_v60, 1 }
  0x4a   : > { %4399 = vmatprep.subr.bf16.mxu1 %v5087_v54 }
  0x4b   : > { %v371_v61 = vadd.f32 %v5239_v17, %v332_v29  ;;  %v374_v29 = vadd.f32 %v5239_v17, %v335_v52  ;;  %v465_v52 = vrot.slane %v5370_v45, 7 }
  0x4c   : > { %4592 = vmatpush3.bf16.msra.mxu0 %v5080_v31  ;;  %v453_v31 = vrot.slane %v5293_v59, 7  ;;  %v334_v59 = vmul.f32 %v4001_v23, %v5231_v13  ;;  %v5544_v23 = vpack.c.bf16 %v5517_v53, %v5515_v51 }
  0x4d   : > { %4625 = vmatprep.subr.bf16.mxu0 %v5082_v33  ;;  %4400 = vmatpush3.bf16.msra.mxu1 %v5087_v54  ;;  %v4104_v54 = vld [vmem:[%s5222_s20 + $0x70] sm:$0xff]   ;;  %v5575_v45 = vmax.f32 %v374_v29, 0.0 }
  0x4e   : > { %4370 = vmatmul.mubr.bf16.gmra.mrb[16].mxu1 %v5478_v8  ;;  %4433 = vmatprep.subr.bf16.mxu1 %v5488_v18  ;;  %v455_v4 = vsel %vm444_vm0, %v453_v31, %v454_v50  ;;  %v4005_v16 = vunpack.c.l.bf16 %v4104_v54  ;;  %v4006_v19 = vunpack.c.h.bf16 %v4104_v54  ;;  %6252 = vst [vmem:[#allocation7_spill] sm:$0xff] %v5544_v23  ;;  %v373_v26 = vadd.f32 %v5239_v17, %v334_v59 }
  0x4f   : > { %4594 = vmatmul.mubr.msk.bf16.vlgmr.msra.gmra.mrb[0].mxu0 %vm5437_vm3, %v5464_v0  ;;  %4373 = vmatprep.mubr.bf16.mxu1 %v5482_v11  ;;  %v5537_v6 = vpack.c.bf16 %v455_v4, %v453_v31  ;;  %v4105_v31 = vld [vmem:[%s5222_s20 + $0x78] sm:$0xff]   ;;  %v5551_v50 = vmax.f32 %v371_v61, 0.0  ;;  %v461_v54 = vsel %vm444_vm0, %v459_v7, %v460_v22  ;;  %v569_v22 = vsel %vm546_vm1, %v567_v20, %v568_v44  ;;  %s6192_s20 = scalar_lea.vmem %s6225_s4, %s3913_s11  ;;  %s3340_s11 = sshll.u32 %s6272_s19, 1 }
  0x50   : > { %4626 = vmatpush3.bf16.msra.mxu0 %v5082_v33  ;;  %4597 = vmatprep.mubr.msk.bf16.mxu0 %vm5437_vm3, %v5492_v25  ;;  %v5534_v33 = vpack.c.bf16 %v5499_v37, %v5497_v36  ;;  %v5560_v59 = vpack.c.bf16 %v461_v54, %v459_v7  ;;  %v336_v61 = vmul.f32 %v4005_v16, %v5231_v13  ;;  %v4009_v2 = vunpack.c.l.bf16 %v4105_v31  ;;  %s235_s15 = scalar_lea.vmem %s6226_s5, %s3340_s11 }
  0x51   : > { %4627 = vmatprep.subr.bf16.mxu0 %v5084_v38  ;;  %v337_v4 = vmul.f32 %v4006_v19, %v5231_v13  ;;  %v5573_v63 = vmax.f32 %v373_v26, 0.0  ;;  %v4010_v7 = vunpack.c.h.bf16 %v4105_v31  ;;  %v5584_v19 = vpack.c.bf16 %v565_v5, %v566_v28  ;;  %v5090_v26 = vld [vmem:[%s6224_s3 + $0x1a0] sm:$0xff]  }
  0x52   : > { %6251 = vst [vmem:[#allocation6_spill] sm:$0xff] %v5534_v33  ;;  %v338_v16 = vmul.f32 %v4009_v2, %v5231_v13  ;;  %v5593_v31 = vpack.c.bf16 %v5565_v60, %v5551_v50  ;;  %v570_v20 = vrot.slane %v5407_v34, 1  ;;  %v571_v28 = vrot.slane %v5409_v10, 1 }
  0x53   : > { %v339_v29 = vmul.f32 %v4010_v7, %v5231_v13  ;;  %v376_v54 = vadd.f32 %v5239_v17, %v337_v4  ;;  %v5600_v5 = vpack.c.bf16 %v5575_v45, %v5573_v63  ;;  %v5092_v13 = vld [vmem:[%s6224_s3 + $0x1a8] sm:$0xff]  }
  0x54   : > { %4628 = vmatpush3.bf16.msra.mxu0 %v5084_v38  ;;  %v466_v38 = vrot.slane %v5372_v46, 7  ;;  %6253 = vst [vmem:[#allocation8_spill] sm:$0xff] %v5593_v31  ;;  %v377_v2 = vadd.f32 %v5239_v17, %v338_v16 }
  0x55   : > { %4629 = vmatprep.subr.bf16.mxu0 %v5086_v1  ;;  %6254 = vst [vmem:[#allocation9_spill] sm:$0xff] %v5600_v5 }
  0x56   : > { %4374 = vmatmul.mubr.bf16.gmra.mrb[20].mxu1 %v5534_v33  ;;  %v467_v46 = vsel %vm444_vm0, %v465_v52, %v466_v38  ;;  %v5608_v38 = vpack.c.bf16 %v568_v44, %v569_v22  ;;  %v5611_v4 = vmax.f32 %v377_v2, 0.0  ;;  %v6232_v33 = vmov 0.0   ;;  %v5096_v22 = vld [vmem:[%s6224_s3 + $0x1b8] sm:$0xff]  }
  0x57   : > { %4598 = vmatmul.mubr.msk.bf16.gmra.mrb[4].mxu0 %vm5437_vm3, %v5506_v32  ;;  %4377 = vmatprep.mubr.bf16.mxu1 %v5544_v23  ;;  %v5581_v12 = vpack.c.bf16 %v467_v46, %v465_v52  ;;  %v378_v52 = vadd.f32 %v5239_v17, %v339_v29  ;;  %v574_v46 = vrot.slane %v5446_v49, 1  ;;  %v5619_v23 = vmax.f32 %v376_v54, 0.0  ;;  %v5094_v54 = vld [vmem:[%s6224_s3 + $0x1b0] sm:$0xff]  }
  0x58   : > { %4601 = vmatprep.mubr.msk.bf16.mxu0 %vm5437_vm3, %v5546_v24  ;;  %4630 = vmatpush3.bf16.msra.mxu0 %v5086_v1  ;;  %v375_v1 = vadd.f32 %v5239_v17, %v336_v61  ;;  %v573_v61 = vrot.slane %v5443_v43, 1  ;;  %v445_v17 = vrot.slane %v6232_v33, 7  ;;  %v594_v44 = vrot.slane %v5611_v4, 1 }
  0x59   : > { %4631 = vmatprep.subr.bf16.mxu0 %v5088_v21  ;;  %v5614_v7 = vmax.f32 %v378_v52, 0.0  ;;  %v572_v29 = vsel %vm546_vm1, %v570_v20, %v571_v28  ;;  %v492_v20 = vrot.slane %v5611_v4, 7 }
  0x5a   : > { %v5617_v16 = vmax.f32 %v375_v1, 0.0  ;;  %v575_v1 = vsel %vm546_vm1, %v573_v61, %v574_v46  ;;  %v5646_v33 = vpack.c.bf16 %v445_v17, %v445_v17  ;;  %v576_v61 = vrot.slane %v5456_v57, 1 }
  0x5b   : > { %v493_v11 = vrot.slane %v5614_v7, 7  ;;  %v5663_v17 = vpack.c.bf16 %v574_v46, %v575_v1 }
  0x5c   : > { %4632 = vmatpush3.bf16.msra.mxu0 %v5088_v21  ;;  %v595_v21 = vrot.slane %v5614_v7, 1  ;;  %v5644_v52 = vpack.c.bf16 %v5619_v23, %v5617_v16 }
  0x5d   : > { %4633 = vmatprep.subr.bf16.mxu0 %v5090_v26  ;;  %v494_v8 = vsel %vm444_vm0, %v492_v20, %v493_v11  ;;  %v5691_v11 = vld [vmem:[%s6224_s3 + $0x1c0] sm:$0xff]  }
  0x5e   : > { %4378 = vmatmul.mubr.bf16.gmra.mrb[24].mxu1 %v5593_v31  ;;  %v596_v2 = vsel %vm546_vm1, %v594_v44, %v595_v21  ;;  %6257 = vst [vmem:[#allocation10_spill] sm:$0xff] %v5644_v52  ;;  %v577_v31 = vrot.slane %v5458_v58, 1  ;;  %v5674_v46 = vpack.c.bf16 %v494_v8, %v492_v20  ;;  %v582_v20 = vrot.slane %v5515_v51, 1 }
  0x5f   : > { %4602 = vmatmul.mubr.msk.bf16.gmra.mrb[8].mxu0 %vm5437_vm3, %v5584_v19  ;;  %4381 = vmatprep.mubr.bf16.mxu1 %v5600_v5  ;;  %v5648_v5 = vpack.c.bf16 %v595_v21, %v596_v2  ;;  %v450_v21 = vrot.slane %v5275_v47, 7  ;;  %v580_v2 = vrot.slane %v5499_v37, 1 }
  0x60   : > { %4605 = vmatprep.mubr.msk.bf16.mxu0 %vm5437_vm3, %v5608_v38  ;;  %4634 = vmatpush3.bf16.msra.mxu0 %v5090_v26  ;;  %v5651_v26 = vpack.c.bf16 %v571_v28, %v572_v29  ;;  %v451_v28 = vrot.slane %v5277_v48, 7  ;;  %v579_v29 = vrot.slane %v5497_v36, 1  ;;  %v578_v47 = vsel %vm546_vm1, %v576_v61, %v577_v31 }
  0x61   : > { %4635 = vmatprep.subr.bf16.mxu0 %v5092_v13  ;;  %v583_v61 = vrot.slane %v5517_v53, 1 }
  0x62   : > { %v452_v48 = vsel %vm444_vm0, %v450_v21, %v451_v28  ;;  %v581_v8 = vsel %vm546_vm1, %v579_v29, %v580_v2  ;;  %v585_v29 = vrot.slane %v5551_v50, 1 }
  0x63   : > { %v5695_v1 = vpack.c.bf16 %v452_v48, %v450_v21  ;;  %v5700_v28 = vpack.c.bf16 %v580_v2, %v581_v8  ;;  %v5093_v2 = vld [vmem:[%s6224_s3 + $0x90] sm:$0xff]   ;;  %v588_v48 = vrot.slane %v5573_v63, 1  ;;  %v589_v8 = vrot.slane %v5575_v45, 1 }
  0x64   : > { %4636 = vmatpush3.bf16.msra.mxu0 %v5092_v13  ;;  %v5693_v13 = vpack.c.bf16 %v577_v31, %v578_v47  ;;  %v5091_v31 = vld [vmem:[%s6224_s3 + $0x88] sm:$0xff]   ;;  %v587_v21 = vsel %vm546_vm1, %v585_v29, %v586_v30  ;;  %v591_v29 = vrot.slane %v5617_v16, 1 }
  0x65   : > { %4637 = vmatprep.subr.bf16.mxu0 %v5094_v54  ;;  %v5732_v47 = vpack.c.bf16 %v586_v30, %v587_v21  ;;  %v468_v21 = vrot.slane %v5407_v34, 7 }
  0x66   : > { %4382 = vmatmul.mubr.bf16.gmra.mrb[28].mxu1 %v5644_v52  ;;  %v456_v52 = vrot.slane %v5317_v14, 7  ;;  %v584_v14 = vsel %vm546_vm1, %v582_v20, %v583_v61  ;;  %v462_v20 = vrot.slane %v5363_v41, 7  ;;  %v590_v41 = vsel %vm546_vm1, %v588_v48, %v589_v8  ;;  %v5099_v48 = vld [vmem:[%s6224_s3 + $0xa8] sm:$0xff]  }
  0x67   : > { %4606 = vmatmul.mubr.msk.bf16.gmra.mrb[12].mxu0 %vm5437_vm3, %v5651_v26  ;;  %4401 = vmatprep.mubr.msk.bf16.mxu1 %vm5659_vm5, %v5646_v33 }
  0x68   : > { %4609 = vmatprep.mubr.msk.bf16.mxu0 %vm5437_vm3, %v5663_v17  ;;  %4638 = vmatpush3.bf16.msra.mxu0 %v5094_v54  ;;  %v457_v54 = vrot.slane %v5319_v15, 7 }
  0x69   : > { %4639 = vmatprep.subr.bf16.mxu0 %v5096_v22 }
  0x6a   : > { %v458_v15 = vsel %vm444_vm0, %v456_v52, %v457_v54  ;;  %v463_v54 = vrot.slane %v5365_v42, 7 }
  0x6c   : > { %4640 = vmatpush3.bf16.msra.mxu0 %v5096_v22  ;;  %v5730_v22 = vpack.c.bf16 %v458_v15, %v456_v52  ;;  %v5095_v52 = vld [vmem:[%s6224_s3 + $0x98] sm:$0xff]   ;;  %v464_v42 = vsel %vm444_vm0, %v462_v20, %v463_v54  ;;  %v472_v54 = vrot.slane %v5446_v49, 7 }
  0x6d   : > { %4673 = vmatprep.subr.bf16.mxu0 %v5691_v11 }
  0x6e   : > { %4402 = vmatmul.mubr.msk.bf16.vlgmr.msra.gmra.mrb[0].mxu1 %vm5659_vm5, %v5284_v55  ;;  %v592_v55 = vrot.slane %v5619_v23, 1 }
  0x6f   : > { %4610 = vmatmul.mubr.msk.bf16.gmra.mrb[16].mxu0 %vm5437_vm3, %v5693_v13  ;;  %4434 = vmatpush3.bf16.msra.mxu1 %v5488_v18  ;;  %v5728_v18 = vpack.c.bf16 %v583_v61, %v584_v14  ;;  %v5097_v61 = vld [vmem:[%s6224_s3 + $0xa0] sm:$0xff]   ;;  %v5763_v14 = vpack.c.bf16 %v464_v42, %v462_v20  ;;  %v471_v20 = vrot.slane %v5443_v43, 7  ;;  %v478_v42 = vrot.slane %v5499_v37, 7 }
  0x70   : > { %4405 = vmatprep.mubr.msk.bf16.mxu1 %vm5659_vm5, %v5695_v1  ;;  %4613 = vmatprep.mubr.msk.bf16.mxu0 %vm5437_vm3, %v5700_v28  ;;  %v593_v30 = vsel %vm546_vm1, %v591_v29, %v592_v55  ;;  %v5103_v29 = vld [vmem:[%s6224_s3 + $0xb8] sm:$0xff]  }
  0x71   : > { %4435 = vmatprep.subr.bf16.mxu1 %v5091_v31  ;;  %v5765_v15 = vpack.c.bf16 %v592_v55, %v593_v30  ;;  %v5783_v55 = vpack.c.bf16 %v5614_v7, %v5611_v4  ;;  %v474_v4 = vrot.slane %v5456_v57, 7  ;;  %v475_v7 = vrot.slane %v5458_v58, 7  ;;  %v5818_v57 = vld [vmem:[%s6224_s3 + $0xc0] sm:$0xff]  }
  0x72   : > { %v473_v43 = vsel %vm444_vm0, %v471_v20, %v472_v54  ;;  %v480_v30 = vrot.slane %v5515_v51, 7  ;;  %v5102_v51 = vld [vmem:[%s6224_s3 + $0x1d0] sm:$0xff]  }
  0x73   : > { %4436 = vmatpush3.bf16.msra.mxu1 %v5091_v31  ;;  %v5761_v31 = vpack.c.bf16 %v589_v8, %v590_v41  ;;  %v476_v49 = vsel %vm444_vm0, %v474_v4, %v475_v7  ;;  %v5820_v58 = vpack.c.bf16 %v473_v43, %v471_v20  ;;  %v477_v41 = vrot.slane %v5497_v36, 7  ;;  %v5104_v20 = vld [vmem:[%s6224_s3 + $0x1d8] sm:$0xff]  }
  0x74   : > { %4437 = vmatprep.subr.bf16.mxu1 %v5093_v2  ;;  %v490_v7 = vrot.slane %v5619_v23, 7 }
  0x75   : > { %v479_v36 = vsel %vm444_vm0, %v477_v41, %v478_v42 }
  0x76   : > { %4406 = vmatmul.mubr.msk.bf16.gmra.mrb[4].mxu1 %vm5659_vm5, %v5537_v6 }
  0x77   : > { %4614 = vmatmul.mubr.msk.bf16.gmra.mrb[20].mxu0 %vm5437_vm3, %v5728_v18  ;;  %4409 = vmatprep.mubr.msk.bf16.mxu1 %vm5659_vm5, %v5730_v22 }
  0x78   : > { %4617 = vmatprep.mubr.msk.bf16.mxu0 %vm5437_vm3, %v5732_v47  ;;  %4438 = vmatpush3.bf16.msra.mxu1 %v5093_v2  ;;  %v469_v2 = vrot.slane %v5409_v10, 7  ;;  %v5101_v10 = vld [vmem:[%s6224_s3 + $0xb0] sm:$0xff]  }
  0x79   : > { %4439 = vmatprep.subr.bf16.mxu1 %v5095_v52 }
  0x7a   : > { %v470_v34 = vsel %vm444_vm0, %v468_v21, %v469_v2 }
  0x7b   : > { %v5792_v8 = vpack.c.bf16 %v470_v34, %v468_v21  ;;  %v5100_v21 = vld [vmem:[%s6224_s3 + $0x1c8] sm:$0xff]   ;;  %v484_v34 = vrot.slane %v5565_v60, 7 }
  0x7c   : > { %4440 = vmatpush3.bf16.msra.mxu1 %v5095_v52  ;;  %v5822_v52 = vpack.c.bf16 %v476_v49, %v474_v4  ;;  %v489_v4 = vrot.slane %v5617_v16, 7  ;;  %v6260_v16 = vmov 0.0   ;;  %v5110_v49 = vld [vmem:[%s6224_s3 + $0x1f0] sm:$0xff]  }
  0x7d   : > { %4441 = vmatprep.subr.bf16.mxu1 %v5097_v61  ;;  %v547_v43 = vrot.slane %v6260_v16, 1  ;;  %v5131_v16 = vld [vmem:[%s6224_s3 + $0x130] sm:$0xff]  }
  0x7e   : > { %4410 = vmatmul.mubr.msk.bf16.gmra.mrb[8].mxu1 %vm5659_vm5, %v5560_v59  ;;  %v491_v23 = vsel %vm444_vm0, %v489_v4, %v490_v7  ;;  %v5127_v7 = vld [vmem:[%s6224_s3 + $0x110] sm:$0xff]  }
  0x7f   : > { %4618 = vmatmul.mubr.msk.bf16.gmra.mrb[24].mxu0 %vm5437_vm3, %v5761_v31  ;;  %4413 = vmatprep.mubr.msk.bf16.mxu1 %vm5659_vm5, %v5763_v14  ;;  %v5906_v42 = vpack.c.bf16 %v547_v43, %v547_v43 }
  0x80   : > { %4621 = vmatprep.mubr.msk.bf16.mxu0 %vm5437_vm3, %v5765_v15  ;;  %4442 = vmatpush3.bf16.msra.mxu1 %v5097_v61  ;;  %v481_v61 = vrot.slane %v5517_v53, 7  ;;  %v5850_v53 = vpack.c.bf16 %v479_v36, %v477_v41  ;;  %v5904_v41 = vpack.c.bf16 %v491_v23, %v489_v4  ;;  %v5109_v36 = vld [vmem:[%s6224_s3 + $0xd0] sm:$0xff]   ;;  %v5126_v4 = vld [vmem:[%s6224_s3 + $0x108] sm:$0xff]   ;;  %v5129_v23 = vld [vmem:[%s6224_s3 + $0x120] sm:$0xff]  }
  0x81   : > { %4443 = vmatprep.subr.bf16.mxu1 %v5099_v48 }
  0x82   : > { %v482_v37 = vsel %vm444_vm0, %v480_v30, %v481_v61  ;;  %v5114_v61 = vld [vmem:[%s6224_s3 + $0x200] sm:$0xff]  }
  0x83   : > { %v5852_v2 = vpack.c.bf16 %v482_v37, %v480_v30  ;;  %v5112_v30 = vld [vmem:[%s6224_s3 + $0x1f8] sm:$0xff]   ;;  %v5115_v37 = vld [vmem:[%s6224_s3 + $0xe8] sm:$0xff]  }
  0x84   : > { %4444 = vmatpush3.bf16.msra.mxu1 %v5099_v48  ;;  %v483_v48 = vrot.slane %v5551_v50, 7 }
  0x85   : > { %4445 = vmatprep.subr.bf16.mxu1 %v5101_v10 }
  0x86   : > { %4414 = vmatmul.mubr.msk.bf16.gmra.mrb[12].mxu1 %vm5659_vm5, %v5581_v12  ;;  %v485_v50 = vsel %vm444_vm0, %v483_v48, %v484_v34  ;;  %v5116_v34 = vld [vmem:[%s6224_s3 + $0x208] sm:$0xff]  }
  0x87   : > { %4622 = vmatmul.mubr.msk.bf16.gmra.mrb[28].mxu0 %vm5437_vm3, %v5648_v5  ;;  %4417 = vmatprep.mubr.msk.bf16.mxu1 %vm5659_vm5, %v5792_v8 }
  0x88   : > { %4641 = vmatprep.mubr.msk.bf16.mxu0 %vm5659_vm5, %v5695_v1  ;;  %4446 = vmatpush3.bf16.msra.mxu1 %v5101_v10  ;;  %v487_v10 = vrot.slane %v5575_v45, 7  ;;  %v5878_v45 = vpack.c.bf16 %v485_v50, %v483_v48  ;;  %v5119_v48 = vld [vmem:[%s6224_s3 + $0xf8] sm:$0xff]  }
  0x89   : > { %4447 = vmatprep.subr.bf16.mxu1 %v5103_v29  ;;  %v6264_v50 = vld [vmem:[#allocation5_spill] sm:$0xff] }
  0x8c   : > { %4448 = vmatpush3.bf16.msra.mxu1 %v5103_v29  ;;  %v5108_v29 = vld [vmem:[%s6224_s3 + $0x1e8] sm:$0xff]  }
  0x8d   : > { %4481 = vmatprep.subr.bf16.mxu1 %v5818_v57 }
  0x8e   : > { %4418 = vmatmul.mubr.msk.bf16.gmra.mrb[16].mxu1 %vm5659_vm5, %v5820_v58 }
  0x8f   : > { %4642 = vmatmul.mubr.msk.bf16.vlgmr.msra.gmra.mrb[0].mxu0 %vm5659_vm5, %v5537_v6  ;;  %4421 = vmatprep.mubr.msk.bf16.mxu1 %vm5659_vm5, %v5822_v52 }
  0x90   : > { %4674 = vmatpush3.bf16.msra.mxu0 %v5691_v11  ;;  %4645 = vmatprep.mubr.msk.bf16.mxu0 %vm5659_vm5, %v5730_v22  ;;  %v486_v11 = vrot.slane %v5573_v63, 7  ;;  %v5106_v63 = vld [vmem:[%s6224_s3 + $0x1e0] sm:$0xff]  }
  0x91   : > { %4675 = vmatprep.subr.bf16.mxu0 %v5100_v21 }
  0x92   : > { %v488_v60 = vsel %vm444_vm0, %v486_v11, %v487_v10  ;;  %v5124_v10 = vld [vmem:[%s6224_s3 + $0x238] sm:$0xff]  }
  0x93   : > { %v5880_v54 = vpack.c.bf16 %v488_v60, %v486_v11  ;;  %v5125_v11 = vld [vmem:[%s6224_s3 + $0x100] sm:$0xff]  }
  0x94   : > { %4676 = vmatpush3.bf16.msra.mxu0 %v5100_v21  ;;  %v5107_v21 = vld [vmem:[%s6224_s3 + $0xc8] sm:$0xff]   ;;  %v6265_v60 = vld [vmem:[#allocation6_spill] sm:$0xff] }
  0x95   : > { %4677 = vmatprep.subr.bf16.mxu0 %v5102_v51 }
  0x96   : > { %4422 = vmatmul.mubr.msk.bf16.gmra.mrb[20].mxu1 %vm5659_vm5, %v5850_v53 }
  0x97   : > { %4646 = vmatmul.mubr.msk.bf16.gmra.mrb[4].mxu0 %vm5659_vm5, %v5560_v59  ;;  %4425 = vmatprep.mubr.msk.bf16.mxu1 %vm5659_vm5, %v5852_v2 }
  0x98   : > { %4649 = vmatprep.mubr.msk.bf16.mxu0 %vm5659_vm5, %v5763_v14  ;;  %4678 = vmatpush3.bf16.msra.mxu0 %v5102_v51  ;;  %v5117_v51 = vld [vmem:[%s6224_s3 + $0xf0] sm:$0xff]  }
  0x99   : > { %4679 = vmatprep.subr.bf16.mxu0 %v5104_v20 }
  0x9c   : > { %4680 = vmatpush3.bf16.msra.mxu0 %v5104_v20  ;;  %v6263_v20 = vld [vmem:[#allocation2_spill] sm:$0xff] }
  0x9d   : > { %4681 = vmatprep.subr.bf16.mxu0 %v5106_v63 }
  0x9e   : > { %4426 = vmatmul.mubr.msk.bf16.gmra.mrb[24].mxu1 %vm5659_vm5, %v5878_v45 }
  0x9f   : > { %4650 = vmatmul.mubr.msk.bf16.gmra.mrb[8].mxu0 %vm5659_vm5, %v5581_v12  ;;  %4429 = vmatprep.mubr.msk.bf16.mxu1 %vm5659_vm5, %v5880_v54 }
  0xa0   : > { %4653 = vmatprep.mubr.msk.bf16.mxu0 %vm5659_vm5, %v5792_v8  ;;  %4682 = vmatpush3.bf16.msra.mxu0 %v5106_v63  ;;  %v6266_v63 = vld [vmem:[#allocation7_spill] sm:$0xff] }
  0xa1   : > { %4683 = vmatprep.subr.bf16.mxu0 %v5108_v29 }
  0xa4   : > { %4684 = vmatpush3.bf16.msra.mxu0 %v5108_v29  ;;  %v5128_v29 = vld [vmem:[%s6224_s3 + $0x118] sm:$0xff]  }
  0xa5   : > { %4685 = vmatprep.subr.bf16.mxu0 %v5110_v49 }
  0xa6   : > { %4430 = vmatmul.mubr.msk.bf16.gmra.mrb[28].mxu1 %vm5659_vm5, %v5904_v41 }
  0xa7   : > { %4654 = vmatmul.mubr.msk.bf16.gmra.mrb[12].mxu0 %vm5659_vm5, %v5820_v58  ;;  %4449 = vmatprep.mubr.msk.bf16.mxu1 %vm5437_vm3, %v5906_v42 }
  0xa8   : > { %4657 = vmatprep.mubr.msk.bf16.mxu0 %vm5659_vm5, %v5822_v52  ;;  %4686 = vmatpush3.bf16.msra.mxu0 %v5110_v49 }
  0xa9   : > { %4687 = vmatprep.subr.bf16.mxu0 %v5112_v30 }
  0xac   : > { %4688 = vmatpush3.bf16.msra.mxu0 %v5112_v30 }
  0xad   : > { %4721 = vmatprep.subr.bf16.mxu0 %v5114_v61 }
  0xae   : > { %4450 = vmatmul.mubr.msk.bf16.vlgmr.msra.gmra.mrb[0].mxu1 %vm5437_vm3, %v5441_v40  ;;  %v5111_v40 = vld [vmem:[%s6224_s3 + $0xd8] sm:$0xff]  }
  0xaf   : > { %4658 = vmatmul.mubr.msk.bf16.gmra.mrb[16].mxu0 %vm5659_vm5, %v5850_v53  ;;  %4482 = vmatpush3.bf16.msra.mxu1 %v5818_v57  ;;  %v5113_v57 = vld [vmem:[%s6224_s3 + $0xe0] sm:$0xff]  }
  0xb0   : > { %4453 = vmatprep.mubr.msk.bf16.mxu1 %vm5437_vm3, %v5464_v0  ;;  %4661 = vmatprep.mubr.msk.bf16.mxu0 %vm5659_vm5, %v5852_v2 }
  0xb1   : > { %4483 = vmatprep.subr.bf16.mxu1 %v5107_v21 }
  0xb3   : > { %4484 = vmatpush3.bf16.msra.mxu1 %v5107_v21 }
  0xb4   : > { %4485 = vmatprep.subr.bf16.mxu1 %v5109_v36 }
  0xb6   : > { %4454 = vmatmul.mubr.msk.bf16.gmra.mrb[4].mxu1 %vm5437_vm3, %v5492_v25 }
  0xb7   : > { %4662 = vmatmul.mubr.msk.bf16.gmra.mrb[20].mxu0 %vm5659_vm5, %v5878_v45  ;;  %4457 = vmatprep.mubr.msk.bf16.mxu1 %vm5437_vm3, %v5506_v32 }
  0xb8   : > { %4665 = vmatprep.mubr.msk.bf16.mxu0 %vm5659_vm5, %v5880_v54  ;;  %4486 = vmatpush3.bf16.msra.mxu1 %v5109_v36 }
  0xb9   : > { %4487 = vmatprep.subr.bf16.mxu1 %v5111_v40 }
  0xbc   : > { %4488 = vmatpush3.bf16.msra.mxu1 %v5111_v40 }
  0xbd   : > { %4489 = vmatprep.subr.bf16.mxu1 %v5113_v57 }
  0xbe   : > { %4458 = vmatmul.mubr.msk.bf16.gmra.mrb[8].mxu1 %vm5437_vm3, %v5546_v24 }
  0xbf   : > { %4666 = vmatmul.mubr.msk.bf16.gmra.mrb[24].mxu0 %vm5659_vm5, %v5904_v41  ;;  %4461 = vmatprep.mubr.msk.bf16.mxu1 %vm5437_vm3, %v5584_v19 }
  0xc0   : > { %4669 = vmatprep.mubr.msk.bf16.mxu0 %vm5659_vm5, %v5674_v46  ;;  %4490 = vmatpush3.bf16.msra.mxu1 %v5113_v57 }
  0xc1   : > { %4491 = vmatprep.subr.bf16.mxu1 %v5115_v37 }
  0xc4   : > { %4492 = vmatpush3.bf16.msra.mxu1 %v5115_v37 }
  0xc5   : > { %4493 = vmatprep.subr.bf16.mxu1 %v5117_v51 }
  0xc6   : > { %4462 = vmatmul.mubr.msk.bf16.gmra.mrb[12].mxu1 %vm5437_vm3, %v5608_v38 }
  0xc7   : > { %4670 = vmatmul.mubr.msk.bf16.gmra.mrb[28].mxu0 %vm5659_vm5, %v5646_v33  ;;  %4465 = vmatprep.mubr.msk.bf16.mxu1 %vm5437_vm3, %v5651_v26  ;;  %v5120_v33 = vld [vmem:[%s6224_s3 + $0x218] sm:$0xff]  }
  0xc8   : > { %4689 = vmatprep.mubr.bf16.mxu0 %v5303_v3  ;;  %4494 = vmatpush3.bf16.msra.mxu1 %v5117_v51  ;;  %v5118_v3 = vld [vmem:[%s6224_s3 + $0x210] sm:$0xff]  }
  0xc9   : > { %4495 = vmatprep.subr.bf16.mxu1 %v5119_v48 }
  0xcc   : > { %4496 = vmatpush3.bf16.msra.mxu1 %v5119_v48 }
  0xcd   : > { %4769 = vmatprep.subr.bf16.mxu1 %v5125_v11 }
  0xce   : > { %4466 = vmatmul.mubr.msk.bf16.gmra.mrb[16].mxu1 %vm5437_vm3, %v5663_v17 }
  0xcf   : > { %4690 = vmatmul.mubr.bf16.vlgmr.msra.gmra.mrb[0].mxu0 %v5312_v9  ;;  %4469 = vmatprep.mubr.msk.bf16.mxu1 %vm5437_vm3, %v5693_v13  ;;  %v5121_v9 = vld [vmem:[%s6224_s3 + $0x220] sm:$0xff]  }
  0xd0   : > { %4722 = vmatpush3.bf16.msra.mxu0 %v5114_v61  ;;  %4693 = vmatprep.mubr.bf16.mxu0 %v5342_v27  ;;  %v5122_v27 = vld [vmem:[%s6224_s3 + $0x228] sm:$0xff]  }
  0xd1   : > { %4723 = vmatprep.subr.bf16.mxu0 %v5116_v34 }
  0xd4   : > { %4724 = vmatpush3.bf16.msra.mxu0 %v5116_v34 }
  0xd5   : > { %4725 = vmatprep.subr.bf16.mxu0 %v5118_v3 }
  0xd6   : > { %4470 = vmatmul.mubr.msk.bf16.gmra.mrb[20].mxu1 %vm5437_vm3, %v5700_v28 }
  0xd7   : > { %4694 = vmatmul.mubr.bf16.gmra.mrb[4].mxu0 %v5351_v35  ;;  %4473 = vmatprep.mubr.msk.bf16.mxu1 %vm5437_vm3, %v5728_v18  ;;  %v6261_v35 = vld [vmem:[#allocation3_spill] sm:$0xff] }
  0xd8   : > { %4697 = vmatprep.mubr.bf16.mxu0 %v5382_v56  ;;  %4726 = vmatpush3.bf16.msra.mxu0 %v5118_v3  ;;  %v5123_v56 = vld [vmem:[%s6224_s3 + $0x230] sm:$0xff]  }
  0xd9   : > { %4727 = vmatprep.subr.bf16.mxu0 %v5120_v33 }
  0xdc   : > { %4728 = vmatpush3.bf16.msra.mxu0 %v5120_v33 }
  0xdd   : > { %4729 = vmatprep.subr.bf16.mxu0 %v5121_v9 }
  0xde   : > { %4474 = vmatmul.mubr.msk.bf16.gmra.mrb[24].mxu1 %vm5437_vm3, %v5732_v47 }
  0xdf   : > { %4698 = vmatmul.mubr.bf16.gmra.mrb[8].mxu0 %v5389_v62  ;;  %4477 = vmatprep.mubr.msk.bf16.mxu1 %vm5437_vm3, %v5761_v31  ;;  %v6262_v62 = vld [vmem:[#allocation4_spill] sm:$0xff] }
  0xe0   : > { %4701 = vmatprep.mubr.bf16.mxu0 %v6261_v35  ;;  %4730 = vmatpush3.bf16.msra.mxu0 %v5121_v9 }
  0xe1   : > { %4731 = vmatprep.subr.bf16.mxu0 %v5122_v27 }
  0xe4   : > { %4732 = vmatpush3.bf16.msra.mxu0 %v5122_v27 }
  0xe5   : > { %4733 = vmatprep.subr.bf16.mxu0 %v5123_v56 }
  0xe6   : > { %4478 = vmatmul.mubr.msk.bf16.gmra.mrb[28].mxu1 %vm5437_vm3, %v5765_v15 }
  0xe7   : > { %4702 = vmatmul.mubr.bf16.gmra.mrb[12].mxu0 %v6262_v62  ;;  %4497 = vmatprep.mubr.msk.bf16.mxu1 %vm5659_vm5, %v6263_v20 }
  0xe8   : > { %4705 = vmatprep.mubr.bf16.mxu0 %v6264_v50  ;;  %4734 = vmatpush3.bf16.msra.mxu0 %v5123_v56 }
  0xe9   : > { %4735 = vmatprep.subr.bf16.mxu0 %v5124_v10 }
  0xec   : > { %4736 = vmatpush3.bf16.msra.mxu0 %v5124_v10 }
  0xee   : > { %4498 = vmatmul.mubr.msk.bf16.vlgmr.msra.gmra.mrb[0].mxu1 %vm5659_vm5, %v5695_v1  ;;  %v6267_v1 = vld [vmem:[#allocation8_spill] sm:$0xff] }
  0xef   : > { %4706 = vmatmul.mubr.bf16.gmra.mrb[16].mxu0 %v6265_v60  ;;  %4777 = vmatpush3.bf16.msra.mxu1 %v5125_v11 }
  0xf0   : > { %4501 = vmatprep.mubr.msk.bf16.mxu1 %vm5659_vm5, %v5537_v6  ;;  %4709 = vmatprep.mubr.bf16.mxu0 %v6266_v63  ;;  %v6268_v6 = vld [vmem:[#allocation9_spill] sm:$0xff] }
  0xf1   : > { %4770 = vmatprep.subr.bf16.mxu1 %v5126_v4 }
  0xf3   : > { %4778 = vmatpush3.bf16.msra.mxu1 %v5126_v4 }
  0xf4   : > { %4771 = vmatprep.subr.bf16.mxu1 %v5127_v7 }
  0xf6   : > { %4502 = vmatmul.mubr.msk.bf16.gmra.mrb[4].mxu1 %vm5659_vm5, %v5730_v22  ;;  %v6269_v22 = vld [vmem:[#allocation10_spill] sm:$0xff] }
  0xf7   : > { %4710 = vmatmul.mubr.bf16.gmra.mrb[20].mxu0 %v6267_v1  ;;  %4505 = vmatprep.mubr.msk.bf16.mxu1 %vm5659_vm5, %v5560_v59  ;;  %v5130_v59 = vld [vmem:[%s6224_s3 + $0x128] sm:$0xff]  }
  0xf8   : > { %4713 = vmatprep.mubr.bf16.mxu0 %v6268_v6  ;;  %4779 = vmatpush3.bf16.msra.mxu1 %v5127_v7 }
  0xf9   : > { %4772 = vmatprep.subr.bf16.mxu1 %v5128_v29 }
  0xfc   : > { %4780 = vmatpush3.bf16.msra.mxu1 %v5128_v29 }
  0xfd   : > { %4773 = vmatprep.subr.bf16.mxu1 %v5129_v23 }
  0xfe   : > { %4506 = vmatmul.mubr.msk.bf16.gmra.mrb[8].mxu1 %vm5659_vm5, %v5763_v14  ;;  %v6270_v14 = vmov 0.0|0.0  }
  0xff   : > { %4714 = vmatmul.mubr.bf16.gmra.mrb[24].mxu0 %v6269_v22  ;;  %4509 = vmatprep.mubr.msk.bf16.mxu1 %vm5659_vm5, %v5581_v12  ;;  %v5132_v12 = vld [vmem:[%s6224_s3 + $0x138] sm:$0xff]  }
 0x100   : > { %4717 = vmatprep.mubr.bf16.mxu0 %v5783_v55  ;;  %4781 = vmatpush3.bf16.msra.mxu1 %v5129_v23 }
 0x101   : > { %4774 = vmatprep.subr.bf16.mxu1 %v5130_v59 }
 0x104   : > { %4782 = vmatpush3.bf16.msra.mxu1 %v5130_v59 }
 0x105   : > { %4775 = vmatprep.subr.bf16.mxu1 %v5131_v16 }
 0x106   : > { %4510 = vmatmul.mubr.msk.bf16.gmra.mrb[12].mxu1 %vm5659_vm5, %v5792_v8 }
 0x107   : > { %4718 = vmatmul.mubr.bf16.gmra.mrb[28].mxu0 %v6270_v14  ;;  %4513 = vmatprep.mubr.msk.bf16.mxu1 %vm5659_vm5, %v5820_v58 }
 0x108   : > { %4737 = vmatprep.mubr.msk.bf16.mxu0 %vm5437_vm3, %v5464_v0  ;;  %4783 = vmatpush3.bf16.msra.mxu1 %v5131_v16 }
 0x109   : > { %4776 = vmatprep.subr.bf16.mxu1 %v5132_v12 }
 0x10c   : > { %4784 = vmatpush3.bf16.msra.mxu1 %v5132_v12 }
 0x10e   : > { %4514 = vmatmul.mubr.msk.bf16.gmra.mrb[16].mxu1 %vm5659_vm5, %v5822_v52 }
 0x10f   : > { %4738 = vmatmul.mubr.msk.bf16.vlgmr.msra.gmra.mrb[0].mxu0 %vm5437_vm3, %v5492_v25  ;;  %4517 = vmatprep.mubr.msk.bf16.mxu1 %vm5659_vm5, %v5850_v53 }
 0x110   : > { %4741 = vmatprep.mubr.msk.bf16.mxu0 %vm5437_vm3, %v5506_v32 }
 0x116   : > { %4518 = vmatmul.mubr.msk.bf16.gmra.mrb[20].mxu1 %vm5659_vm5, %v5852_v2 }
 0x117   : > { %4742 = vmatmul.mubr.msk.bf16.gmra.mrb[4].mxu0 %vm5437_vm3, %v5546_v24  ;;  %4521 = vmatprep.mubr.msk.bf16.mxu1 %vm5659_vm5, %v5878_v45 }
 0x118   : > { %4745 = vmatprep.mubr.msk.bf16.mxu0 %vm5437_vm3, %v5584_v19 }
 0x11e   : > { %4522 = vmatmul.mubr.msk.bf16.gmra.mrb[24].mxu1 %vm5659_vm5, %v5880_v54 }
 0x11f   : > { %4746 = vmatmul.mubr.msk.bf16.gmra.mrb[8].mxu0 %vm5437_vm3, %v5608_v38  ;;  %4525 = vmatprep.mubr.msk.bf16.mxu1 %vm5659_vm5, %v5904_v41 }
 0x120   : > { %4749 = vmatprep.mubr.msk.bf16.mxu0 %vm5437_vm3, %v5651_v26 }
 0x126   : > { %4526 = vmatmul.mubr.msk.bf16.gmra.mrb[28].mxu1 %vm5659_vm5, %v5674_v46 }
 0x127   : > { %4750 = vmatmul.mubr.msk.bf16.gmra.mrb[12].mxu0 %vm5437_vm3, %v5663_v17  ;;  %4561 = vmatprep.mubr.bf16.mxu1 %v6262_v62 }
 0x128   : > { %4753 = vmatprep.mubr.msk.bf16.mxu0 %vm5437_vm3, %v5693_v13 }
 0x12e   : > { %4562 = vmatmul.mubr.bf16.vlgmr.msra.gmra.mrb[16].mxu1 %v6264_v50 }
 0x12f   : > { %4754 = vmatmul.mubr.msk.bf16.gmra.mrb[16].mxu0 %vm5437_vm3, %v5700_v28  ;;  %4565 = vmatprep.mubr.bf16.mxu1 %v6265_v60 }
 0x130   : > { %4757 = vmatprep.mubr.msk.bf16.mxu0 %vm5437_vm3, %v5728_v18 }
 0x136   : > { %4566 = vmatmul.mubr.bf16.gmra.mrb[20].mxu1 %v6266_v63 }
 0x137   : > { %4758 = vmatmul.mubr.msk.bf16.gmra.mrb[20].mxu0 %vm5437_vm3, %v5732_v47  ;;  %4569 = vmatprep.mubr.bf16.mxu1 %v6267_v1 }
 0x138   : > { %4761 = vmatprep.mubr.msk.bf16.mxu0 %vm5437_vm3, %v5761_v31 }
 0x13e   : > { %4570 = vmatmul.mubr.bf16.gmra.mrb[24].mxu1 %v6268_v6 }
 0x13f   : > { %4762 = vmatmul.mubr.msk.bf16.gmra.mrb[24].mxu0 %vm5437_vm3, %v5765_v15  ;;  %4573 = vmatprep.mubr.bf16.mxu1 %v6269_v22 }
 0x140   : > { %4765 = vmatprep.mubr.msk.bf16.mxu0 %vm5437_vm3, %v5648_v5 }
 0x146   : > { %4574 = vmatmul.mubr.bf16.gmra.mrb[28].mxu1 %v5783_v55 }
 0x147   : > { %4766 = vmatmul.mubr.msk.bf16.gmra.mrb[28].mxu0 %vm5437_vm3, %v5906_v42 }
 0x1c1   : > { %v4499_v0 = vpop.f32.mrb[0].mxu1 }
 0x1c2   : > { %v1507_v25 = vpop.f32.mrb[1].mxu1 }
 0x1c3   : > { %v4500_v32 = vpop.f32.mrb[2].mxu1 }
 0x1c4   : > { %v1510_v24 = vpop.f32.mrb[3].mxu1 }
 0x1c9   : > { %v4503_v19 = vpop.f32.mrb[4].mxu1 }
 0x1ca   : > { %v1523_v38 = vpop.f32.mrb[5].mxu1 }
 0x1cb   : > { %v4504_v26 = vpop.f32.mrb[6].mxu1 }
 0x1cc   : > { %v1526_v44 = vpop.f32.mrb[7].mxu1 }
 0x1d1   : > { %v4507_v17 = vpop.f32.mrb[8].mxu1 }
 0x1d2   : > { %v1539_v46 = vpop.f32.mrb[9].mxu1 }
 0x1d3   : > { %v4508_v13 = vpop.f32.mrb[10].mxu1 }
 0x1d4   : > { %v1542_v28 = vpop.f32.mrb[11].mxu1 }
 0x1d9   : > { %v6179_v5 = vpop.f32.mrb[12].mxu1 }
 0x1da   : > { %v6181_v18 = vpop.f32.mrb[13].mxu1 }
 0x1db   : > { %v6183_v47 = vpop.f32.mrb[14].mxu1 }
 0x1dc   : > { %v6185_v39 = vpop.f32.mrb[15].mxu1 }
 0x1e2   : > { %v4739_v31 = vpop.f32.mrb[0].mxu0 }
 0x1e3   : > { %v4785_v15 = vadd.f32 %v4739_v31, %v4499_v0  ;;  %v2797_v55 = vpop.f32.mrb[1].mxu0 }
 0x1e4   : > { %v4786_v8 = vadd.f32 %v2797_v55, %v1507_v25  ;;  %v4740_v58 = vpop.f32.mrb[2].mxu0 }
 0x1e5   : > { %v4787_v52 = vadd.f32 %v4740_v58, %v4500_v32  ;;  %v2800_v53 = vpop.f32.mrb[3].mxu0  ;;  %v3155_v42 = vmul.f32 %v4785_v15, %v4785_v15 }
 0x1e6   : > { %v4788_v2 = vadd.f32 %v2800_v53, %v1510_v24  ;;  %v3153_v54 = vmul.f32 %v4786_v8, %v4786_v8 }
 0x1e7   : > { %v4019_v45 = vpack.c.bf16 %v4787_v52, %v4785_v15  ;;  %v3156_v57 = vmul.f32 %v4787_v52, %v4787_v52 }
 0x1e8   : > { %v4014_v43 = vpack.c.bf16 %v4788_v2, %v4786_v8  ;;  %v3116_v49 = vadd.f32 %v4788_v2, %v4786_v8  ;;  %v3154_v41 = vmul.f32 %v4788_v2, %v4788_v2 }
 0x1e9   : > { %4106 = vst [vmem:[%s6192_s20 + $0x8] sm:$0xff] %v4019_v45  }
 0x1ea   : > { %4015 = vst [vmem:[%s6192_s20] sm:$0xff] %v4014_v43   ;;  %v3117_v30 = vadd.f32 %v4785_v15, %v3116_v49  ;;  %v3185_v61 = vadd.f32 %v3154_v41, %v3153_v54  ;;  %v4743_v21 = vpop.f32.mrb[4].mxu0 }
 0x1eb   : > { %v4789_v36 = vadd.f32 %v4743_v21, %v4503_v19  ;;  %v2813_v40 = vpop.f32.mrb[5].mxu0 }
 0x1ec   : > { %v3186_v37 = vadd.f32 %v3185_v61, %v3155_v42  ;;  %v4790_v51 = vadd.f32 %v2813_v40, %v1523_v38  ;;  %v3118_v48 = vadd.f32 %v4787_v52, %v3117_v30  ;;  %v4744_v34 = vpop.f32.mrb[6].mxu0 }
 0x1ed   : > { %v4791_v11 = vadd.f32 %v4744_v34, %v4504_v26  ;;  %v2816_v3 = vpop.f32.mrb[7].mxu0  ;;  %v3159_v60 = vmul.f32 %v4789_v36, %v4789_v36 }
 0x1ee   : > { %v3119_v33 = vadd.f32 %v4790_v51, %v3118_v48  ;;  %v3157_v9 = vmul.f32 %v4790_v51, %v4790_v51  ;;  %v3187_v27 = vadd.f32 %v3186_v37, %v3156_v57  ;;  %v4792_v35 = vadd.f32 %v2816_v3, %v1526_v44 }
 0x1ef   : > { %v4029_v56 = vpack.c.bf16 %v4791_v11, %v4789_v36  ;;  %v3160_v29 = vmul.f32 %v4791_v11, %v4791_v11 }
 0x1f0   : > { %v3188_v10 = vadd.f32 %v3187_v27, %v3157_v9  ;;  %v4024_v62 = vpack.c.bf16 %v4792_v35, %v4790_v51  ;;  %v3120_v20 = vadd.f32 %v4792_v35, %v3119_v33  ;;  %v3158_v50 = vmul.f32 %v4792_v35, %v4792_v35 }
 0x1f1   : > { %4108 = vst [vmem:[%s6192_s20 + $0x18] sm:$0xff] %v4029_v56  }
 0x1f2   : > { %4107 = vst [vmem:[%s6192_s20 + $0x10] sm:$0xff] %v4024_v62   ;;  %v3121_v63 = vadd.f32 %v4789_v36, %v3120_v20  ;;  %v3189_v4 = vadd.f32 %v3188_v10, %v3158_v50  ;;  %v4747_v7 = vpop.f32.mrb[8].mxu0 }
 0x1f3   : > { %v4793_v1 = vadd.f32 %v4747_v7, %v4507_v17  ;;  %v2829_v6 = vpop.f32.mrb[9].mxu0 }
 0x1f4   : > { %v3190_v23 = vadd.f32 %v3189_v4, %v3159_v60  ;;  %v4794_v22 = vadd.f32 %v2829_v6, %v1539_v46  ;;  %v3122_v59 = vadd.f32 %v4791_v11, %v3121_v63  ;;  %v4748_v16 = vpop.f32.mrb[10].mxu0 }
 0x1f5   : > { %v4795_v14 = vadd.f32 %v4748_v16, %v4508_v13  ;;  %v2832_v12 = vpop.f32.mrb[11].mxu0  ;;  %v3163_v17 = vmul.f32 %v4793_v1, %v4793_v1 }
 0x1f6   : > { %v3123_v0 = vadd.f32 %v4794_v22, %v3122_v59  ;;  %v3161_v25 = vmul.f32 %v4794_v22, %v4794_v22  ;;  %v3191_v32 = vadd.f32 %v3190_v23, %v3160_v29  ;;  %v4796_v24 = vadd.f32 %v2832_v12, %v1542_v28 }
 0x1f7   : > { %v4039_v19 = vpack.c.bf16 %v4795_v14, %v4793_v1  ;;  %v3164_v13 = vmul.f32 %v4795_v14, %v4795_v14 }
 0x1f8   : > { %v3192_v38 = vadd.f32 %v3191_v32, %v3161_v25  ;;  %v4034_v26 = vpack.c.bf16 %v4796_v24, %v4794_v22  ;;  %v3124_v44 = vadd.f32 %v4796_v24, %v3123_v0  ;;  %v3162_v31 = vmul.f32 %v4796_v24, %v4796_v24 }
 0x1f9   : > { %4110 = vst [vmem:[%s6192_s20 + $0x28] sm:$0xff] %v4039_v19  }
 0x1fa   : > { %4109 = vst [vmem:[%s6192_s20 + $0x20] sm:$0xff] %v4034_v26   ;;  %v3125_v15 = vadd.f32 %v4793_v1, %v3124_v44  ;;  %v3193_v55 = vadd.f32 %v3192_v38, %v3162_v31  ;;  %v4751_v46 = vpop.f32.mrb[12].mxu0 }
 0x1fb   : > { %v4797_v8 = vadd.f32 %v4751_v46, %v6179_v5  ;;  %v2845_v58 = vpop.f32.mrb[13].mxu0 }
 0x1fc   : > { %v3194_v52 = vadd.f32 %v3193_v55, %v3163_v17  ;;  %v4798_v53 = vadd.f32 %v2845_v58, %v6181_v18  ;;  %v3126_v28 = vadd.f32 %v4795_v14, %v3125_v15  ;;  %v4752_v2 = vpop.f32.mrb[14].mxu0 }
 0x1fd   : > { %v4799_v45 = vadd.f32 %v4752_v2, %v6183_v47  ;;  %v2848_v54 = vpop.f32.mrb[15].mxu0  ;;  %v3167_v57 = vmul.f32 %v4797_v8, %v4797_v8 }
 0x1fe   : > { %v3127_v43 = vadd.f32 %v4798_v53, %v3126_v28  ;;  %v3165_v49 = vmul.f32 %v4798_v53, %v4798_v53  ;;  %v3195_v41 = vadd.f32 %v3194_v52, %v3164_v13  ;;  %v4800_v42 = vadd.f32 %v2848_v54, %v6185_v39 }
 0x1ff   : > { %v4049_v30 = vpack.c.bf16 %v4799_v45, %v4797_v8  ;;  %v3168_v3 = vmul.f32 %v4799_v45, %v4799_v45 }
 0x200   : > { %v3196_v61 = vadd.f32 %v3195_v41, %v3165_v49  ;;  %v4044_v5 = vpack.c.bf16 %v4800_v42, %v4798_v53  ;;  %v3128_v21 = vadd.f32 %v4800_v42, %v3127_v43  ;;  %v3166_v36 = vmul.f32 %v4800_v42, %v4800_v42 }
 0x201   : > { %4112 = vst [vmem:[%s6192_s20 + $0x38] sm:$0xff] %v4049_v30   ;;  %v4563_v40 = vpop.f32.mrb[16].mxu1 }
 0x202   : > { %4111 = vst [vmem:[%s6192_s20 + $0x30] sm:$0xff] %v4044_v5   ;;  %v3129_v18 = vadd.f32 %v4797_v8, %v3128_v21  ;;  %v3197_v37 = vadd.f32 %v3196_v61, %v3166_v36  ;;  %v4755_v51 = vpop.f32.mrb[16].mxu0  ;;  %v1829_v48 = vpop.f32.mrb[17].mxu1 }
 0x203   : > { %v4801_v47 = vadd.f32 %v4755_v51, %v4563_v40  ;;  %v2861_v34 = vpop.f32.mrb[17].mxu0  ;;  %v4564_v11 = vpop.f32.mrb[18].mxu1 }
 0x204   : > { %v3198_v33 = vadd.f32 %v3197_v37, %v3167_v57  ;;  %v4802_v39 = vadd.f32 %v2861_v34, %v1829_v48  ;;  %v3130_v9 = vadd.f32 %v4799_v45, %v3129_v18  ;;  %v4756_v27 = vpop.f32.mrb[18].mxu0  ;;  %v1832_v35 = vpop.f32.mrb[19].mxu1 }
 0x205   : > { %v4803_v56 = vadd.f32 %v4756_v27, %v4564_v11  ;;  %v2864_v10 = vpop.f32.mrb[19].mxu0  ;;  %v3171_v23 = vmul.f32 %v4801_v47, %v4801_v47 }
 0x206   : > { %v3131_v62 = vadd.f32 %v4802_v39, %v3130_v9  ;;  %v3169_v20 = vmul.f32 %v4802_v39, %v4802_v39  ;;  %v3199_v50 = vadd.f32 %v3198_v33, %v3168_v3  ;;  %v4804_v60 = vadd.f32 %v2864_v10, %v1832_v35 }
 0x207   : > { %v4059_v63 = vpack.c.bf16 %v4803_v56, %v4801_v47  ;;  %v3172_v32 = vmul.f32 %v4803_v56, %v4803_v56 }
 0x208   : > { %v3200_v4 = vadd.f32 %v3199_v50, %v3169_v20  ;;  %v4054_v7 = vpack.c.bf16 %v4804_v60, %v4802_v39  ;;  %v3132_v1 = vadd.f32 %v4804_v60, %v3131_v62  ;;  %v3170_v6 = vmul.f32 %v4804_v60, %v4804_v60 }
 0x209   : > { %4114 = vst [vmem:[%s6192_s20 + $0x48] sm:$0xff] %v4059_v63   ;;  %v4567_v29 = vpop.f32.mrb[20].mxu1 }
 0x20a   : > { %4113 = vst [vmem:[%s6192_s20 + $0x40] sm:$0xff] %v4054_v7   ;;  %v3133_v22 = vadd.f32 %v4801_v47, %v3132_v1  ;;  %v3201_v59 = vadd.f32 %v3200_v4, %v3170_v6  ;;  %v4759_v16 = vpop.f32.mrb[20].mxu0  ;;  %v1845_v14 = vpop.f32.mrb[21].mxu1 }
 0x20b   : > { %v4805_v12 = vadd.f32 %v4759_v16, %v4567_v29  ;;  %v2877_v0 = vpop.f32.mrb[21].mxu0  ;;  %v4568_v25 = vpop.f32.mrb[22].mxu1 }
 0x20c   : > { %v3202_v24 = vadd.f32 %v3201_v59, %v3171_v23  ;;  %v4806_v19 = vadd.f32 %v2877_v0, %v1845_v14  ;;  %v3134_v38 = vadd.f32 %v4803_v56, %v3133_v22  ;;  %v4760_v26 = vpop.f32.mrb[22].mxu0  ;;  %v1848_v44 = vpop.f32.mrb[23].mxu1 }
 0x20d   : > { %v4807_v31 = vadd.f32 %v4760_v26, %v4568_v25  ;;  %v2880_v17 = vpop.f32.mrb[23].mxu0  ;;  %v3175_v45 = vmul.f32 %v4805_v12, %v4805_v12 }
 0x20e   : > { %v3135_v15 = vadd.f32 %v4806_v19, %v3134_v38  ;;  %v3173_v55 = vmul.f32 %v4806_v19, %v4806_v19  ;;  %v3203_v46 = vadd.f32 %v3202_v24, %v3172_v32  ;;  %v4808_v8 = vadd.f32 %v2880_v17, %v1848_v44 }
 0x20f   : > { %v4069_v58 = vpack.c.bf16 %v4807_v31, %v4805_v12  ;;  %v3176_v5 = vmul.f32 %v4807_v31, %v4807_v31 }
 0x210   : > { %v3204_v13 = vadd.f32 %v3203_v46, %v3173_v55  ;;  %v4064_v52 = vpack.c.bf16 %v4808_v8, %v4806_v19  ;;  %v3136_v53 = vadd.f32 %v4808_v8, %v3135_v15  ;;  %v3174_v28 = vmul.f32 %v4808_v8, %v4808_v8 }
 0x211   : > { %4116 = vst [vmem:[%s6192_s20 + $0x58] sm:$0xff] %v4069_v58   ;;  %v4571_v2 = vpop.f32.mrb[24].mxu1 }
 0x212   : > { %4115 = vst [vmem:[%s6192_s20 + $0x50] sm:$0xff] %v4064_v52   ;;  %v3137_v54 = vadd.f32 %v4805_v12, %v3136_v53  ;;  %v3205_v43 = vadd.f32 %v3204_v13, %v3174_v28  ;;  %v4763_v49 = vpop.f32.mrb[24].mxu0  ;;  %v1861_v41 = vpop.f32.mrb[25].mxu1 }
 0x213   : > { %v4809_v42 = vadd.f32 %v4763_v49, %v4571_v2  ;;  %v2893_v30 = vpop.f32.mrb[25].mxu0  ;;  %v4572_v61 = vpop.f32.mrb[26].mxu1  ;;  %v5144_v2 = vmov 1966171168  }
 0x214   : > { %v3206_v21 = vadd.f32 %v3205_v43, %v3175_v45  ;;  %v4810_v36 = vadd.f32 %v2893_v30, %v1861_v41  ;;  %v3138_v40 = vadd.f32 %v4807_v31, %v3137_v54  ;;  %v4764_v57 = vpop.f32.mrb[26].mxu0  ;;  %v1864_v18 = vpop.f32.mrb[27].mxu1  ;;  %v3226_v45 = vunpack.c.l.s4 %v5144_v2 }
 0x215   : > { %v4811_v37 = vadd.f32 %v4764_v57, %v4572_v61  ;;  %v2896_v51 = vpop.f32.mrb[27].mxu0  ;;  %v3179_v56 = vmul.f32 %v4809_v42, %v4809_v42  ;;  %v3228_v54 = vlaneseq }
 0x216   : > { %v3139_v48 = vadd.f32 %v4810_v36, %v3138_v40  ;;  %v3177_v47 = vmul.f32 %v4810_v36, %v4810_v36  ;;  %v3207_v34 = vadd.f32 %v3206_v21, %v3176_v5  ;;  %v4812_v11 = vadd.f32 %v2896_v51, %v1864_v18 }
 0x217   : > { %v4079_v3 = vpack.c.bf16 %v4811_v37, %v4809_v42  ;;  %v3180_v7 = vmul.f32 %v4811_v37, %v4811_v37  ;;  %v3227_v30 = vunpack.c.0.s8 %v3226_v45  ;;  %v3229_v61 = vshrl.u32 %v3228_v54, 7 }
 0x218   : > { %v3208_v33 = vadd.f32 %v3207_v34, %v3177_v47  ;;  %v4074_v39 = vpack.c.bf16 %v4812_v11, %v4810_v36  ;;  %v3140_v9 = vadd.f32 %v4812_v11, %v3139_v48  ;;  %v3178_v27 = vmul.f32 %v4812_v11, %v4812_v11 }
 0x219   : > { %4118 = vst [vmem:[%s6192_s20 + $0x68] sm:$0xff] %v4079_v3   ;;  %v4575_v35 = vpop.f32.mrb[28].mxu1  ;;  %v3230_v40 = vsub.s32 %v3227_v30, %v3229_v61  ;;  %vm3242_vm6 = vcmp.lt.s32.totalorder %v3228_v54, 256 }
 0x21a   : > { %4117 = vst [vmem:[%s6192_s20 + $0x60] sm:$0xff] %v4074_v39   ;;  %v3141_v10 = vadd.f32 %v4809_v42, %v3140_v9  ;;  %v3209_v62 = vadd.f32 %v3208_v33, %v3178_v27  ;;  %v4767_v20 = vpop.f32.mrb[28].mxu0  ;;  %v1877_v50 = vpop.f32.mrb[29].mxu1 }
 0x21b   : > { %v4813_v60 = vadd.f32 %v4767_v20, %v4575_v35  ;;  %v2909_v63 = vpop.f32.mrb[29].mxu0  ;;  %v4576_v4 = vpop.f32.mrb[30].mxu1 }
 0x21c   : > { %v3210_v1 = vadd.f32 %v3209_v62, %v3179_v56  ;;  %v4814_v6 = vadd.f32 %v2909_v63, %v1877_v50  ;;  %v3142_v29 = vadd.f32 %v4811_v37, %v3141_v10  ;;  %v4768_v23 = vpop.f32.mrb[30].mxu0  ;;  %v1880_v22 = vpop.f32.mrb[31].mxu1 }
 0x21d   : > { %v4815_v59 = vadd.f32 %v4768_v23, %v4576_v4  ;;  %v2912_v16 = vpop.f32.mrb[31].mxu0  ;;  %v3183_v44 = vmul.f32 %v4813_v60, %v4813_v60 }
 0x21e   : > { %v3143_v14 = vadd.f32 %v4814_v6, %v3142_v29  ;;  %v3181_v12 = vmul.f32 %v4814_v6, %v4814_v6  ;;  %v3211_v0 = vadd.f32 %v3210_v1, %v3180_v7  ;;  %v4816_v25 = vadd.f32 %v2912_v16, %v1880_v22 }
 0x21f   : > { %v4089_v32 = vpack.c.bf16 %v4815_v59, %v4813_v60  ;;  %v3184_v15 = vmul.f32 %v4815_v59, %v4815_v59 }
 0x220   : > { %v3212_v24 = vadd.f32 %v3211_v0, %v3181_v12  ;;  %v4084_v19 = vpack.c.bf16 %v4816_v25, %v4814_v6  ;;  %v3144_v38 = vadd.f32 %v4816_v25, %v3143_v14  ;;  %v3182_v26 = vmul.f32 %v4816_v25, %v4816_v25 }
 0x221   : > { %4120 = vst [vmem:[%s6192_s20 + $0x78] sm:$0xff] %v4089_v32  }
 0x222   : > { %4119 = vst [vmem:[%s6192_s20 + $0x70] sm:$0xff] %v4084_v19   ;;  %v3145_v31 = vadd.f32 %v4813_v60, %v3144_v38  ;;  %v3213_v17 = vadd.f32 %v3212_v24, %v3182_v26 }
 0x224   : > { %v3146_v55 = vadd.f32 %v4815_v59, %v3145_v31  ;;  %v3214_v46 = vadd.f32 %v3213_v17, %v3183_v44 }
 0x226   : > { %v3147_v8 = vrot.slane %v3146_v55, 4  ;;  %v3215_v58 = vadd.f32 %v3214_v46, %v3184_v15 }
 0x228   : > { %v3148_v13 = vadd.f32 %v3147_v8, %v3146_v55  ;;  %v3216_v52 = vrot.slane %v3215_v58, 4 }
 0x22a   : > { %v3149_v53 = vrot.slane %v3148_v13, 2  ;;  %v3217_v28 = vadd.f32 %v3216_v52, %v3215_v58 }
 0x22c   : > { %v3150_v43 = vadd.f32 %v3149_v53, %v3148_v13  ;;  %v3218_v49 = vrot.slane %v3217_v28, 2 }
 0x22e   : > { %v3151_v41 = vrot.slane %v3150_v43, 1  ;;  %v3219_v42 = vadd.f32 %v3218_v49, %v3217_v28 }
 0x230   : > { %v3220_v5 = vrot.slane %v3219_v42, 1  ;;  %v3152_v21 = vadd.f32 %v3151_v41, %v3150_v43 }
 0x232   : > { %v3221_v36 = vadd.f32 %v3220_v5, %v3219_v42 }
 0x234   : > { %v3224_v57 = vcombine.low %v3152_v21, %v3221_v36 }
 0x236   : > { %v3231_v18 = vrot.slane %v3224_v57, %v3230_v40 }
 0x238   : > { %v3238_v37 = vrot.slane %v3231_v18, %v3230_v40 }
 0x23a   : > { %3244 = vst.msk [vmem:[%s235_s15] sm:$0x3] %vm3242_vm6, %v3238_v37 }
 0x23b PF: > { %s16_s18 = sadd.s32 1, %s5139_s18  }
 0x23c   : > { %p13_p4 = scmp.ge.s32.totalorder %s16_s18, 4  }
 0x23e   :  { %15 = sbr.rel (!%p13_p4) target bundleno = 1 (0x1), region = 86 }

</bundles_post_ra>
